<compile_context>
chip_gen: v6e
topology: v6e:2x2x1
jax: 0.10.0
libtpu: 0.0.40
codegen_flags: <defaults>
</compile_context>

<pallas_src>
import jax
import jax.numpy as jnp
from jax import lax
from jax.experimental import pallas as pl
from jax.experimental.pallas import tpu as pltpu


def _attention_kernel(v_ref, q_ref, wv_ref, bv_ref, wq_ref, bq_ref,
                      vpt_ref, qorg_ref):
    # q_org = q @ Wq^T + bq  -> (B, H)   (Wq in PyTorch (out, in) layout)
    qorg_ref[...] = (
        lax.dot_general(
            q_ref[...], wq_ref[...],
            dimension_numbers=(((1,), (1,)), ((), ())),
            preferred_element_type=jnp.float32,
        )
        + bq_ref[...]
    )
    # v_proj^T per batch: (H, K) = Wv @ v[b]^T + bv[:, None].
    # B is tiny and static -> unrolled Python loop (B MXU matmuls).
    B = v_ref.shape[0]
    for b in range(B):
        vpt_ref[b] = (
            lax.dot_general(
                wv_ref[...], v_ref[b],
                dimension_numbers=(((1,), (1,)), ((), ())),
                preferred_element_type=jnp.float32,
            )
            + bv_ref[...]
        )
    # softmax over the size-1 last axis == 1 exactly, so x = p_attn * v_proj
    # == v_proj; the logits/softmax/dropout branch never affects the output
    # and Wl/bl are intentionally not loaded.


@jax.jit
def new_attention_multihead(v, q, params):
    """v: (B, K, v_dim) f32, q: (B, q_dim) f32 -> (B, H*K + H) f32.

    params use PyTorch nn.Linear layout: wv (H, v_dim), bv (H,), wq (H, q_dim),
    bq (H,), wl (1, H), bl (1,).  wl/bl feed a provably-dead branch.
    """
    wv, bv, wq, bq, _wl, _bl = params
    B, K, v_dim = v.shape
    q_dim = q.shape[-1]
    H = wv.shape[0]                     # num_hid (== d_k, since h == 1)

    vpt, q_org = pl.pallas_call(
        _attention_kernel,
        out_shape=(
            jax.ShapeDtypeStruct((B, H, K), jnp.float32),   # v_proj^T
            jax.ShapeDtypeStruct((B, H), jnp.float32),      # q_org
        ),
        grid=(1,),                      # single fused step (overhead-bound)
        in_specs=[
            pl.BlockSpec((B, K, v_dim), lambda i: (0, 0, 0)),   # v
            pl.BlockSpec((B, q_dim), lambda i: (0, 0)),         # q
            pl.BlockSpec((H, v_dim), lambda i: (0, 0)),         # Wv (out, in)
            pl.BlockSpec((H, 1), lambda i: (0, 0)),             # bv as column
            pl.BlockSpec((H, q_dim), lambda i: (0, 0)),         # Wq (out, in)
            pl.BlockSpec((1, H), lambda i: (0, 0)),             # bq as row
        ],
        out_specs=(
            pl.BlockSpec((B, H, K), lambda i: (0, 0, 0)),       # v_proj^T
            pl.BlockSpec((B, H), lambda i: (0, 0)),             # q_org
        ),
        compiler_params=pltpu.CompilerParams(
            dimension_semantics=("arbitrary",)),
    )(v, q, wv, bv.reshape(H, 1), wq, bq.reshape(1, H))

    # x.transpose(1,2).view(B,-1,H).permute(0,2,1).contiguous().view(-1, H*K):
    # vpt is already (B, H, K), so this is a free row-major reshape.
    v_emb = vpt.reshape(B, H * K)
    # torch.cat([v_emb, q_org], -1): single copy fusion inside this jit.
    return jnp.concatenate([v_emb, q_org], axis=-1)


def _reference(v, q, params):
    """Pure-JAX reference of the PyTorch forward (eval mode), full dead path included."""
    wv, bv, wq, bq, wl, bl = params     # PyTorch Linear layout: (out, in)
    B, K, _ = v.shape
    H = wv.shape[0]
    v_proj = v @ wv.T + bv                                   # (B, K, H)
    q_org = q @ wq.T + bq                                    # (B, H)
    q_proj = jnp.repeat(q_org[:, None, :], K, axis=1)        # (B, K, H)
    v4 = v_proj.reshape(B, K, 1, H).transpose(0, 2, 1, 3)    # (B, 1, K, H)
    q4 = q_proj.reshape(B, K, 1, H).transpose(0, 2, 1, 3)
    joint = v4 * q4                                          # dropout == id (eval)
    logits = joint @ wl.T + bl                               # (B, 1, K, 1)
    p_attn = jax.nn.softmax(logits, axis=-1)                 # ones (size-1 axis)
    x = p_attn * v4                                          # (B, 1, K, H)
    x = x.transpose(0, 2, 1, 3).reshape(B, K, H)
    v_emb = x.transpose(0, 2, 1).reshape(-1, 512 * 7 * 7)
    return jnp.concatenate([v_emb, q_org], axis=-1)


if __name__ == "__main__":
    # Shapes implied by the module: the hard-coded view(-1, 512*7*7) requires
    # num_hid * k == 25088, i.e. num_hid = 512, k = 49.
    B, K = 2, 49
    v_dim, q_dim, num_hid = 32, 32, 512

    key = jax.random.PRNGKey(0)
    k1, k2, k3, k4, k5, k6, k7, k8 = jax.random.split(key, 8)

    v = jax.random.normal(k1, (B, K, v_dim), dtype=jnp.float32)
    q = jax.random.normal(k2, (B, q_dim), dtype=jnp.float32)

    # Deterministic parameter init (PyTorch nn.Linear layout (out, in),
    # uniform +/- 1/sqrt(fan_in)).
    def init_linear(kw, kb, fan_in, fan_out):
        bound = 1.0 / jnp.sqrt(fan_in)
        w = jax.random.uniform(kw, (fan_out, fan_in), jnp.float32, -bound, bound)
        b = jax.random.uniform(kb, (fan_out,), jnp.float32, -bound, bound)
        return w, b

    wv, bv = init_linear(k3, k4, v_dim, num_hid)
    wq, bq = init_linear(k5, k6, q_dim, num_hid)
    wl, bl = init_linear(k7, k8, num_hid, 1)
    params = (wv, bv, wq, bq, wl, bl)

    out = new_attention_multihead(v, q, params)
    out = jax.block_until_ready(out)

    ref = _reference(v, q, params)
    assert out.shape == (B, num_hid * K + num_hid), out.shape
    assert jnp.allclose(out, ref, atol=1e-4, rtol=1e-4), "mismatch vs reference"

    print("KERNEL_OK")
</pallas_src>

<mosaic_0001>
module attributes {stable_mosaic.version = 11 : i64} {
  func.func @_attention_kernel(%arg0: i32, %arg1: memref<2x49x32xf32, #tpu.memory_space<vmem>>, %arg2: memref<2x32xf32, #tpu.memory_space<vmem>>, %arg3: memref<512x32xf32, #tpu.memory_space<vmem>>, %arg4: memref<512x1xf32, #tpu.memory_space<vmem>>, %arg5: memref<512x32xf32, #tpu.memory_space<vmem>>, %arg6: memref<1x512xf32, #tpu.memory_space<vmem>>, %arg7: memref<2x512x49xf32, #tpu.memory_space<vmem>>, %arg8: memref<2x512xf32, #tpu.memory_space<vmem>>) attributes {dimension_semantics = [#tpu.dimension_semantics<arbitrary>], iteration_bounds = array<i64: 1>, scalar_prefetch = 0 : i64, scratch_operands = 0 : i64, tpu.core_type = #tpu.core_type<tc>, window_params = [{pipeline_mode = #tpu.pipeline_mode<synchronous>, transform_indices = @transform_0, window_bounds = array<i64: 2, 49, 32>}, {pipeline_mode = #tpu.pipeline_mode<synchronous>, transform_indices = @transform_1, window_bounds = array<i64: 2, 32>}, {pipeline_mode = #tpu.pipeline_mode<synchronous>, transform_indices = @transform_2, window_bounds = array<i64: 512, 32>}, {pipeline_mode = #tpu.pipeline_mode<synchronous>, transform_indices = @transform_3, window_bounds = array<i64: 512, 1>}, {pipeline_mode = #tpu.pipeline_mode<synchronous>, transform_indices = @transform_4, window_bounds = array<i64: 512, 32>}, {pipeline_mode = #tpu.pipeline_mode<synchronous>, transform_indices = @transform_5, window_bounds = array<i64: 1, 512>}, {pipeline_mode = #tpu.pipeline_mode<synchronous>, transform_indices = @transform_6, window_bounds = array<i64: 2, 512, 49>}, {pipeline_mode = #tpu.pipeline_mode<synchronous>, transform_indices = @transform_7, window_bounds = array<i64: 2, 512>}]} {
    %c0 = arith.constant 0 : index
    %c0_0 = arith.constant 0 : index
    %0 = vector.load %arg2[%c0, %c0_0] : memref<2x32xf32, #tpu.memory_space<vmem>>, vector<2x32xf32>
    %c0_1 = arith.constant 0 : index
    %c0_2 = arith.constant 0 : index
    %1 = vector.load %arg5[%c0_1, %c0_2] : memref<512x32xf32, #tpu.memory_space<vmem>>, vector<512x32xf32>
    %cst = arith.constant dense<0.000000e+00> : vector<2x512xf32>
    %2 = tpu.matmul %0, %1, %cst {dimension_numbers = #tpu.dot_dimension_numbers<[1], [1], [0], [0], [0, 0, 1, 0], [], []>} : vector<2x32xf32>, vector<512x32xf32>, vector<2x512xf32> -> vector<2x512xf32>
    %c0_3 = arith.constant 0 : index
    %c0_4 = arith.constant 0 : index
    %3 = vector.load %arg6[%c0_3, %c0_4] : memref<1x512xf32, #tpu.memory_space<vmem>>, vector<1x512xf32>
    %4 = vector.broadcast %3 : vector<1x512xf32> to vector<2x512xf32>
    %5 = arith.addf %2, %4 : vector<2x512xf32>
    %c0_5 = arith.constant 0 : index
    %c0_6 = arith.constant 0 : index
    %6 = vector.load %arg8[%c0_5, %c0_6] : memref<2x512xf32, #tpu.memory_space<vmem>>, vector<2x512xf32>
    tpu.vector_store %arg8[%c0_5, %c0_6], %5 {strides = array<i32>} : memref<2x512xf32, #tpu.memory_space<vmem>>, vector<2x512xf32>,
    %c0_7 = arith.constant 0 : index
    %c0_8 = arith.constant 0 : index
    %7 = vector.load %arg3[%c0_7, %c0_8] : memref<512x32xf32, #tpu.memory_space<vmem>>, vector<512x32xf32>
    %c0_9 = arith.constant 0 : index
    %c0_10 = arith.constant 0 : index
    %c0_11 = arith.constant 0 : index
    %8 = vector.load %arg1[%c0_9, %c0_10, %c0_11] : memref<2x49x32xf32, #tpu.memory_space<vmem>>, vector<1x49x32xf32>
    %9 = vector.shape_cast %8 : vector<1x49x32xf32> to vector<49x32xf32>
    %cst_12 = arith.constant dense<0.000000e+00> : vector<512x49xf32>
    %10 = tpu.matmul %7, %9, %cst_12 {dimension_numbers = #tpu.dot_dimension_numbers<[1], [1], [0], [0], [0, 0, 1, 0], [], []>} : vector<512x32xf32>, vector<49x32xf32>, vector<512x49xf32> -> vector<512x49xf32>
    %c0_13 = arith.constant 0 : index
    %c0_14 = arith.constant 0 : index
    %11 = vector.load %arg4[%c0_13, %c0_14] : memref<512x1xf32, #tpu.memory_space<vmem>>, vector<512x1xf32>
    %12 = vector.broadcast %11 : vector<512x1xf32> to vector<512x49xf32>
    %13 = arith.addf %10, %12 : vector<512x49xf32>
    %c0_15 = arith.constant 0 : index
    %c0_16 = arith.constant 0 : index
    %c0_17 = arith.constant 0 : index
    %14 = vector.load %arg7[%c0_15, %c0_16, %c0_17] : memref<2x512x49xf32, #tpu.memory_space<vmem>>, vector<1x512x49xf32>
    %15 = vector.shape_cast %14 : vector<1x512x49xf32> to vector<512x49xf32>
    %16 = vector.shape_cast %13 : vector<512x49xf32> to vector<1x512x49xf32>
    tpu.vector_store %arg7[%c0_15, %c0_16, %c0_17], %16 {strides = array<i32>} : memref<2x512x49xf32, #tpu.memory_space<vmem>>, vector<1x512x49xf32>,
    %c0_18 = arith.constant 0 : index
    %c0_19 = arith.constant 0 : index
    %17 = vector.load %arg3[%c0_18, %c0_19] : memref<512x32xf32, #tpu.memory_space<vmem>>, vector<512x32xf32>
    %c1 = arith.constant 1 : index
    %c0_20 = arith.constant 0 : index
    %c0_21 = arith.constant 0 : index
    %18 = vector.load %arg1[%c1, %c0_20, %c0_21] : memref<2x49x32xf32, #tpu.memory_space<vmem>>, vector<1x49x32xf32>
    %19 = vector.shape_cast %18 : vector<1x49x32xf32> to vector<49x32xf32>
    %cst_22 = arith.constant dense<0.000000e+00> : vector<512x49xf32>
    %20 = tpu.matmul %17, %19, %cst_22 {dimension_numbers = #tpu.dot_dimension_numbers<[1], [1], [0], [0], [0, 0, 1, 0], [], []>} : vector<512x32xf32>, vector<49x32xf32>, vector<512x49xf32> -> vector<512x49xf32>
    %c0_23 = arith.constant 0 : index
    %c0_24 = arith.constant 0 : index
    %21 = vector.load %arg4[%c0_23, %c0_24] : memref<512x1xf32, #tpu.memory_space<vmem>>, vector<512x1xf32>
    %22 = vector.broadcast %21 : vector<512x1xf32> to vector<512x49xf32>
    %23 = arith.addf %20, %22 : vector<512x49xf32>
    %c1_25 = arith.constant 1 : index
    %c0_26 = arith.constant 0 : index
    %c0_27 = arith.constant 0 : index
    %24 = vector.load %arg7[%c1_25, %c0_26, %c0_27] : memref<2x512x49xf32, #tpu.memory_space<vmem>>, vector<1x512x49xf32>
    %25 = vector.shape_cast %24 : vector<1x512x49xf32> to vector<512x49xf32>
    %26 = vector.shape_cast %23 : vector<512x49xf32> to vector<1x512x49xf32>
    tpu.vector_store %arg7[%c1_25, %c0_26, %c0_27], %26 {strides = array<i32>} : memref<2x512x49xf32, #tpu.memory_space<vmem>>, vector<1x512x49xf32>,
    return
  }
  func.func @transform_0(%arg0: i32) -> (i32, i32, i32) {
    %c0_i32 = arith.constant 0 : i32
    %c0_i32_0 = arith.constant 0 : i32
    %c0_i32_1 = arith.constant 0 : i32
    %c0_i32_2 = arith.constant 0 : i32
    return %c0_i32, %c0_i32_0, %c0_i32_1 : i32, i32, i32
  }
  func.func @transform_1(%arg0: i32) -> (i32, i32) {
    %c0_i32 = arith.constant 0 : i32
    %c0_i32_0 = arith.constant 0 : i32
    %c0_i32_1 = arith.constant 0 : i32
    return %c0_i32, %c0_i32_0 : i32, i32
  }
  func.func @transform_2(%arg0: i32) -> (i32, i32) {
    %c0_i32 = arith.constant 0 : i32
    %c0_i32_0 = arith.constant 0 : i32
    %c0_i32_1 = arith.constant 0 : i32
    return %c0_i32, %c0_i32_0 : i32, i32
  }
  func.func @transform_3(%arg0: i32) -> (i32, i32) {
    %c0_i32 = arith.constant 0 : i32
    %c0_i32_0 = arith.constant 0 : i32
    %c0_i32_1 = arith.constant 0 : i32
    return %c0_i32, %c0_i32_0 : i32, i32
  }
  func.func @transform_4(%arg0: i32) -> (i32, i32) {
    %c0_i32 = arith.constant 0 : i32
    %c0_i32_0 = arith.constant 0 : i32
    %c0_i32_1 = arith.constant 0 : i32
    return %c0_i32, %c0_i32_0 : i32, i32
  }
  func.func @transform_5(%arg0: i32) -> (i32, i32) {
    %c0_i32 = arith.constant 0 : i32
    %c0_i32_0 = arith.constant 0 : i32
    %c0_i32_1 = arith.constant 0 : i32
    return %c0_i32, %c0_i32_0 : i32, i32
  }
  func.func @transform_6(%arg0: i32) -> (i32, i32, i32) {
    %c0_i32 = arith.constant 0 : i32
    %c0_i32_0 = arith.constant 0 : i32
    %c0_i32_1 = arith.constant 0 : i32
    %c0_i32_2 = arith.constant 0 : i32
    return %c0_i32, %c0_i32_0, %c0_i32_1 : i32, i32, i32
  }
  func.func @transform_7(%arg0: i32) -> (i32, i32) {
    %c0_i32 = arith.constant 0 : i32
    %c0_i32_0 = arith.constant 0 : i32
    %c0_i32_1 = arith.constant 0 : i32
    return %c0_i32, %c0_i32_0 : i32, i32
  }
}

</mosaic_0001>

<bundles_post_ra>
// kernel: new_attention_multihead.1
= control target key start
LH: loop header
LB: loop body
LE: loop exit
PB: predicated region body
PF: predicated region fallthrough
CT: control target
= control target key end

     0   :  { %vm112_vm0 = vcmask 261120   ;;  %v3431_v0 = vmov 0   ;;  %vm1526_vm1 = vcmask 400384   ;;  %s5413_s4 = inlined_call_operand.vmem [shape: f32[512,32], index: 4, kind: input, shape index: {}]   ;;  %s5414_s3 = inlined_call_operand.vmem [shape: f32[512,1], index: 3, kind: input, shape index: {}]   ;;  %s5415_s1 = inlined_call_operand.vmem [shape: f32[2,32], index: 1, kind: input, shape index: {}]   ;;  %s5416_s0 = inlined_call_operand.vmem [shape: f32[2,49,32], index: 0, kind: input, shape index: {}]   ;;  %s5417_s2 = inlined_call_operand.vmem [shape: f32[512,32], index: 2, kind: input, shape index: {}]   ;;  %s5418_s5 = inlined_call_operand.vmem [shape: f32[1,512], index: 5, kind: input, shape index: {}]   ;;  %s5419_s7 = inlined_call_operand.vmem [shape: f32[2,512], index: 7, kind: output, shape index: {1}]   ;;  %s5420_s6 = inlined_call_operand.vmem [shape: f32[2,512,49], index: 6, kind: output, shape index: {0}]  }
   0x1   :  { %3430 = vset.pattern.permute.xlu1 %v3431_v0  ;;  %3429 = vset.pattern.permute.xlu0 %v3431_v0  ;;  %v57_v1 = vld [vmem:[%s5413_s4 + $0xf8] sm:$0xff]  ;;  %v3482_v3 = vld [vmem:[%s5414_s3 + $0x10] sm:$0xff]  ;;  %v3489_v4 = vld [vmem:[%s5414_s3] sm:$0xff] }
   0x2   :  { %v89_v2 = vld [vmem:[%s5413_s4 + $0x1f8] sm:$0xff]  ;;  %2997 = vmatprep.subr.msk.mxu0 %vm112_vm0, %v57_v1  ;;  %620 = vperm.xlu1 %3430, %v3482_v3   ;;  %v56_v7 = vld [vmem:[%s5413_s4 + $0xf0] sm:$0xff]  ;;  %v3515_v10 = vld [vmem:[%s5414_s3 + $0x8] sm:$0xff] }
   0x3   :  { %3031 = vmatprep.subr.msk.mxu1 %vm112_vm0, %v89_v2  ;;  %v41_v5 = vld [vmem:[%s5413_s4 + $0x78] sm:$0xff]  ;;  %610 = vperm.xlu0 %3429, %v3489_v4   ;;  %v88_v8 = vld [vmem:[%s5413_s4 + $0x1f0] sm:$0xff]  ;;  %v55_v13 = vld [vmem:[%s5413_s4 + $0xe8] sm:$0xff] }
   0x4   :  { %v73_v6 = vld [vmem:[%s5413_s4 + $0x178] sm:$0xff]  ;;  %2998 = vmatpush3.xpose.msk.msra.mxu0 %vm112_vm0, %v41_v5  ;;  %v40_v11 = vld [vmem:[%s5413_s4 + $0x70] sm:$0xff]  ;;  %v87_v14 = vld [vmem:[%s5413_s4 + $0x1e8] sm:$0xff] }
   0x5   :  { %3032 = vmatpush3.xpose.msk.msra.mxu1 %vm112_vm0, %v73_v6  ;;  %v3510_v9 = vld [vmem:[%s5414_s3 + $0x18] sm:$0xff]  ;;  %2999 = vmatprep.subr.msk.mxu0 %vm112_vm0, %v56_v7  ;;  %v72_v12 = vld [vmem:[%s5413_s4 + $0x170] sm:$0xff]  ;;  %v3538_v15 = vld [vmem:[%s5414_s3 + $0x28] sm:$0xff] }
   0x6   :  { %3033 = vmatprep.subr.msk.mxu1 %vm112_vm0, %v88_v8  ;;  %625 = vperm.xlu1 %3430, %v3510_v9   ;;  %v3543_v16 = vld [vmem:[%s5414_s3 + $0x20] sm:$0xff]  ;;  %v39_v17 = vld [vmem:[%s5413_s4 + $0x68] sm:$0xff]  ;;  %v3566_v21 = vld [vmem:[%s5414_s3 + $0x38] sm:$0xff] }
   0x7   :  { %615 = vperm.xlu0 %3429, %v3515_v10   ;;  %v71_v18 = vld [vmem:[%s5413_s4 + $0x168] sm:$0xff]  ;;  %v54_v19 = vld [vmem:[%s5413_s4 + $0xe0] sm:$0xff]  ;;  %v3571_v22 = vld [vmem:[%s5414_s3 + $0x30] sm:$0xff] }
   0x8   :  { %3000 = vmatpush3.xpose.msk.msra.mxu0 %vm112_vm0, %v40_v11  ;;  %v86_v20 = vld [vmem:[%s5413_s4 + $0x1e0] sm:$0xff]  ;;  %v53_v25 = vld [vmem:[%s5413_s4 + $0xd8] sm:$0xff]  ;;  %v3594_v27 = vld [vmem:[%s5414_s3 + $0x48] sm:$0xff] }
   0x9   :  { %3034 = vmatpush3.xpose.msk.msra.mxu1 %vm112_vm0, %v72_v12  ;;  %3001 = vmatprep.subr.msk.mxu0 %vm112_vm0, %v55_v13  ;;  %v38_v23 = vld [vmem:[%s5413_s4 + $0x60] sm:$0xff]  ;;  %v85_v26 = vld [vmem:[%s5413_s4 + $0x1d8] sm:$0xff]  ;;  %v52_v31 = vld [vmem:[%s5413_s4 + $0xd0] sm:$0xff] }
   0xa   :  { %3035 = vmatprep.subr.msk.mxu1 %vm112_vm0, %v87_v14  ;;  %635 = vperm.xlu1 %3430, %v3538_v15   ;;  %v70_v24 = vld [vmem:[%s5413_s4 + $0x160] sm:$0xff]  ;;  %v37_v29 = vld [vmem:[%s5413_s4 + $0x58] sm:$0xff]  ;;  %v84_v32 = vld [vmem:[%s5413_s4 + $0x1d0] sm:$0xff] }
   0xb   :  { %630 = vperm.xlu0 %3429, %v3543_v16   ;;  %v3599_v28 = vld [vmem:[%s5414_s3 + $0x40] sm:$0xff]  ;;  %v69_v30 = vld [vmem:[%s5413_s4 + $0x158] sm:$0xff]  ;;  %v3627_v34 = vld [vmem:[%s5414_s3 + $0x50] sm:$0xff] }
   0xc   :  { %3002 = vmatpush3.xpose.msk.msra.mxu0 %vm112_vm0, %v39_v17  ;;  %v3622_v33 = vld [vmem:[%s5414_s3 + $0x58] sm:$0xff]  ;;  %v36_v35 = vld [vmem:[%s5413_s4 + $0x50] sm:$0xff]  ;;  %v51_v37 = vld [vmem:[%s5413_s4 + $0xc8] sm:$0xff] }
   0xd   :  { %3036 = vmatpush3.xpose.msk.msra.mxu1 %vm112_vm0, %v71_v18  ;;  %3003 = vmatprep.subr.msk.mxu0 %vm112_vm0, %v54_v19  ;;  %v68_v36 = vld [vmem:[%s5413_s4 + $0x150] sm:$0xff]  ;;  %v83_v38 = vld [vmem:[%s5413_s4 + $0x1c8] sm:$0xff]  ;;  %v3655_v40 = vld [vmem:[%s5414_s3 + $0x60] sm:$0xff] }
   0xe   :  { %3037 = vmatprep.subr.msk.mxu1 %vm112_vm0, %v86_v20  ;;  %645 = vperm.xlu1 %3430, %v3566_v21   ;;  %v3650_v39 = vld [vmem:[%s5414_s3 + $0x68] sm:$0xff]  ;;  %v50_v43 = vld [vmem:[%s5413_s4 + $0xc0] sm:$0xff]  ;;  %v3678_v45 = vld [vmem:[%s5414_s3 + $0x78] sm:$0xff] }
   0xf   :  { %640 = vperm.xlu0 %3429, %v3571_v22   ;;  %v35_v41 = vld [vmem:[%s5413_s4 + $0x48] sm:$0xff]  ;;  %v82_v44 = vld [vmem:[%s5413_s4 + $0x1c0] sm:$0xff]  ;;  %v3683_v46 = vld [vmem:[%s5414_s3 + $0x70] sm:$0xff] }
  0x10   :  { %3004 = vmatpush3.xpose.msk.msra.mxu0 %vm112_vm0, %v38_v23  ;;  %v67_v42 = vld [vmem:[%s5413_s4 + $0x148] sm:$0xff]  ;;  %v34_v47 = vld [vmem:[%s5413_s4 + $0x40] sm:$0xff]  ;;  %v49_v49 = vld [vmem:[%s5413_s4 + $0xb8] sm:$0xff] }
  0x11   :  { %3038 = vmatpush3.xpose.msk.msra.mxu1 %vm112_vm0, %v70_v24  ;;  %3005 = vmatprep.subr.msk.mxu0 %vm112_vm0, %v53_v25  ;;  %v66_v48 = vld [vmem:[%s5413_s4 + $0x140] sm:$0xff]  ;;  %v81_v50 = vld [vmem:[%s5413_s4 + $0x1b8] sm:$0xff]  ;;  %v3706_v51 = vld [vmem:[%s5414_s3 + $0x88] sm:$0xff] }
  0x12   :  { %3039 = vmatprep.subr.msk.mxu1 %vm112_vm0, %v85_v26  ;;  %655 = vperm.xlu1 %3430, %v3594_v27   ;;  %v3711_v52 = vld [vmem:[%s5414_s3 + $0x80] sm:$0xff]  ;;  %v33_v53 = vld [vmem:[%s5413_s4 + $0x38] sm:$0xff]  ;;  %v48_v56 = vld [vmem:[%s5413_s4 + $0xb0] sm:$0xff] }
  0x13   :  { %650 = vperm.xlu0 %3429, %v3599_v28   ;;  %v65_v54 = vld [vmem:[%s5413_s4 + $0x138] sm:$0xff]  ;;  %v3724_v55 = vld [vmem:[%s5415_s1] sm:$0x3]  ;;  %v80_v57 = vld [vmem:[%s5413_s4 + $0x1b0] sm:$0xff] }
  0x14   :  { %3006 = vmatpush3.xpose.msk.msra.mxu0 %vm112_vm0, %v37_v29  ;;  %3029 = vmatprep.mubr.msk.f32.mxu0 %vm112_vm0, %v3724_v55  ;;  %v3743_v58 = vld [vmem:[%s5414_s3 + $0x98] sm:$0xff]  ;;  %v3748_v59 = vld [vmem:[%s5414_s3 + $0x90] sm:$0xff]  ;;  %v47_v62 = vld [vmem:[%s5413_s4 + $0xa8] sm:$0xff] }
  0x15   :  { %3040 = vmatpush3.xpose.msk.msra.mxu1 %vm112_vm0, %v69_v30  ;;  %3007 = vmatprep.subr.msk.mxu0 %vm112_vm0, %v52_v31  ;;  %v32_v60 = vld [vmem:[%s5413_s4 + $0x30] sm:$0xff]  ;;  %v79_v63 = vld [vmem:[%s5413_s4 + $0x1a8] sm:$0xff]  ;;  %v3776_v1 = vld [vmem:[%s5414_s3 + $0xa0] sm:$0xff] }
  0x16   :  { %3041 = vmatprep.subr.msk.mxu1 %vm112_vm0, %v84_v32  ;;  %665 = vperm.xlu1 %3430, %v3622_v33   ;;  %v64_v61 = vld [vmem:[%s5413_s4 + $0x130] sm:$0xff]  ;;  %v3771_v0 = vld [vmem:[%s5414_s3 + $0xa8] sm:$0xff]  ;;  %v46_v6 = vld [vmem:[%s5413_s4 + $0xa0] sm:$0xff] }
  0x17   :  { %660 = vperm.xlu0 %3429, %v3627_v34   ;;  %3063 = vmatprep.mubr.msk.f32.mxu1 %vm112_vm0, %v3724_v55  ;;  %v31_v2 = vld [vmem:[%s5413_s4 + $0x28] sm:$0xff]  ;;  %v78_v7 = vld [vmem:[%s5413_s4 + $0x1a0] sm:$0xff]  ;;  %v3799_v8 = vld [vmem:[%s5414_s3 + $0xb8] sm:$0xff] }
  0x18   :  { %3008 = vmatpush3.xpose.msk.msra.mxu0 %vm112_vm0, %v36_v35  ;;  %v63_v5 = vld [vmem:[%s5413_s4 + $0x128] sm:$0xff]  ;;  %v3804_v11 = vld [vmem:[%s5414_s3 + $0xb0] sm:$0xff]  ;;  %v30_v12 = vld [vmem:[%s5413_s4 + $0x20] sm:$0xff] }
  0x19   :  { %3042 = vmatpush3.xpose.msk.msra.mxu1 %vm112_vm0, %v68_v36  ;;  %3009 = vmatprep.subr.msk.mxu0 %vm112_vm0, %v51_v37  ;;  %v62_v13 = vld [vmem:[%s5413_s4 + $0x120] sm:$0xff]  ;;  %v45_v14 = vld [vmem:[%s5413_s4 + $0x98] sm:$0xff]  ;;  %v3827_v18 = vld [vmem:[%s5414_s3 + $0xc8] sm:$0xff] }
  0x1a   :  { %3043 = vmatprep.subr.msk.mxu1 %vm112_vm0, %v83_v38  ;;  %675 = vperm.xlu1 %3430, %v3650_v39   ;;  %v77_v17 = vld [vmem:[%s5413_s4 + $0x198] sm:$0xff]  ;;  %v3832_v19 = vld [vmem:[%s5414_s3 + $0xc0] sm:$0xff]  ;;  %v44_v24 = vld [vmem:[%s5413_s4 + $0x90] sm:$0xff] }
  0x1b   :  { %670 = vperm.xlu0 %3429, %v3655_v40   ;;  %v29_v20 = vld [vmem:[%s5413_s4 + $0x18] sm:$0xff]  ;;  %v76_v25 = vld [vmem:[%s5413_s4 + $0x190] sm:$0xff]  ;;  %v43_v32 = vld [vmem:[%s5413_s4 + $0x88] sm:$0xff] }
  0x1c   :  { %3010 = vmatpush3.xpose.msk.msra.mxu0 %vm112_vm0, %v35_v41  ;;  %v61_v23 = vld [vmem:[%s5413_s4 + $0x118] sm:$0xff]  ;;  %v3860_v29 = vld [vmem:[%s5414_s3 + $0xd0] sm:$0xff]  ;;  %v75_v35 = vld [vmem:[%s5413_s4 + $0x188] sm:$0xff] }
  0x1d   :  { %3044 = vmatpush3.xpose.msk.msra.mxu1 %vm112_vm0, %v67_v42  ;;  %3011 = vmatprep.subr.msk.mxu0 %vm112_vm0, %v50_v43  ;;  %v3855_v26 = vld [vmem:[%s5414_s3 + $0xd8] sm:$0xff]  ;;  %v28_v30 = vld [vmem:[%s5413_s4 + $0x10] sm:$0xff]  ;;  %v3883_v36 = vld [vmem:[%s5414_s3 + $0xe8] sm:$0xff] }
  0x1e   :  { %3045 = vmatprep.subr.msk.mxu1 %vm112_vm0, %v82_v44  ;;  %685 = vperm.xlu1 %3430, %v3678_v45   ;;  %v60_v31 = vld [vmem:[%s5413_s4 + $0x110] sm:$0xff]  ;;  %v3888_v37 = vld [vmem:[%s5414_s3 + $0xe0] sm:$0xff]  ;;  %v27_v38 = vld [vmem:[%s5413_s4 + $0x8] sm:$0xff] }
  0x1f   :  { %680 = vperm.xlu0 %3429, %v3683_v46   ;;  %v59_v41 = vld [vmem:[%s5413_s4 + $0x108] sm:$0xff]  ;;  %v42_v42 = vld [vmem:[%s5413_s4 + $0x80] sm:$0xff]  ;;  %v3911_v44 = vld [vmem:[%s5414_s3 + $0xf8] sm:$0xff] }
  0x20   :  { %3012 = vmatpush3.xpose.msk.msra.mxu0 %vm112_vm0, %v34_v47  ;;  %v74_v43 = vld [vmem:[%s5413_s4 + $0x180] sm:$0xff]  ;;  %v3916_v47 = vld [vmem:[%s5414_s3 + $0xf0] sm:$0xff] }
  0x21   :  { %3046 = vmatpush3.xpose.msk.msra.mxu1 %vm112_vm0, %v66_v48  ;;  %3013 = vmatprep.subr.msk.mxu0 %vm112_vm0, %v49_v49  ;;  %v26_v48 = vld [vmem:[%s5413_s4] sm:$0xff] }
  0x22   :  { %3047 = vmatprep.subr.msk.mxu1 %vm112_vm0, %v81_v50  ;;  %695 = vperm.xlu1 %3430, %v3706_v51   ;;  %v58_v49 = vld [vmem:[%s5413_s4 + $0x100] sm:$0xff]  ;;  %v543_v50 = vld [vmem:[%s5416_s0 + $0x30] sm:$0x1] }
  0x23   :  { %690 = vperm.xlu0 %3429, %v3711_v52  }
  0x24   :  { %3014 = vmatpush3.xpose.msk.msra.mxu0 %vm112_vm0, %v33_v53  ;;  %v2861_v53 = vld [vmem:[%s5416_s0 + $0x68] sm:$0x1] }
  0x25   :  { %3048 = vmatpush3.xpose.msk.msra.mxu1 %vm112_vm0, %v65_v54  ;;  %3015 = vmatprep.subr.msk.mxu0 %vm112_vm0, %v48_v56  ;;  %v3939_v54 = vld [vmem:[%s5414_s3 + $0x108] sm:$0xff]  ;;  %v3944_v56 = vld [vmem:[%s5414_s3 + $0x100] sm:$0xff] }
  0x26   :  { %3049 = vmatprep.subr.msk.mxu1 %vm112_vm0, %v80_v57  ;;  %705 = vperm.xlu1 %3430, %v3743_v58   ;;  %v542_v57 = vld [vmem:[%s5416_s0 + $0x28] sm:$0xff] }
  0x27   :  { %700 = vperm.xlu0 %3429, %v3748_v59  }
  0x28   :  { %3016 = vmatpush3.xpose.msk.msra.mxu0 %vm112_vm0, %v32_v60  ;;  %v2860_v60 = vld [vmem:[%s5416_s0 + $0x60] sm:$0xff] }
  0x29   :  { %3050 = vmatpush3.xpose.msk.msra.mxu1 %vm112_vm0, %v64_v61  ;;  %3017 = vmatprep.subr.msk.mxu0 %vm112_vm0, %v47_v62  ;;  %v3963_v61 = vld [vmem:[%s5414_s3 + $0x118] sm:$0xff]  ;;  %v3968_v62 = vld [vmem:[%s5414_s3 + $0x110] sm:$0xff] }
  0x2a   :  { %3051 = vmatprep.subr.msk.mxu1 %vm112_vm0, %v79_v63  ;;  %715 = vperm.xlu1 %3430, %v3771_v0   ;;  %v473_v63 = vld [vmem:[%s5417_s2] sm:$0xff] }
  0x2b   :  { %710 = vperm.xlu0 %3429, %v3776_v1  }
  0x2c   :  { %3018 = vmatpush3.xpose.msk.msra.mxu0 %vm112_vm0, %v31_v2  ;;  %v2859_v2 = vld [vmem:[%s5416_s0 + $0x58] sm:$0xff] }
  0x2d   :  { %3052 = vmatpush3.xpose.msk.msra.mxu1 %vm112_vm0, %v63_v5  ;;  %3019 = vmatprep.subr.msk.mxu0 %vm112_vm0, %v46_v6  ;;  %v3988_v5 = vld [vmem:[%s5414_s3 + $0x128] sm:$0xff]  ;;  %v3993_v6 = vld [vmem:[%s5414_s3 + $0x120] sm:$0xff] }
  0x2e   :  { %3053 = vmatprep.subr.msk.mxu1 %vm112_vm0, %v78_v7  ;;  %725 = vperm.xlu1 %3430, %v3799_v8   ;;  %v540_v7 = vld [vmem:[%s5416_s0 + $0x18] sm:$0xff] }
  0x2f   :  { %720 = vperm.xlu0 %3429, %v3804_v11  }
  0x30   :  { %3020 = vmatpush3.xpose.msk.msra.mxu0 %vm112_vm0, %v30_v12  ;;  %v2858_v12 = vld [vmem:[%s5416_s0 + $0x50] sm:$0xff] }
  0x31   :  { %3054 = vmatpush3.xpose.msk.msra.mxu1 %vm112_vm0, %v62_v13  ;;  %3021 = vmatprep.subr.msk.mxu0 %vm112_vm0, %v45_v14  ;;  %v4012_v13 = vld [vmem:[%s5414_s3 + $0x138] sm:$0xff]  ;;  %v4017_v14 = vld [vmem:[%s5414_s3 + $0x130] sm:$0xff] }
  0x32   :  { %3055 = vmatprep.subr.msk.mxu1 %vm112_vm0, %v77_v17  ;;  %735 = vperm.xlu1 %3430, %v3827_v18   ;;  %v539_v17 = vld [vmem:[%s5416_s0 + $0x10] sm:$0xff] }
  0x33   :  { %730 = vperm.xlu0 %3429, %v3832_v19  }
  0x34   :  { %3022 = vmatpush3.xpose.msk.msra.mxu0 %vm112_vm0, %v29_v20  ;;  %v2857_v20 = vld [vmem:[%s5416_s0 + $0x48] sm:$0xff] }
  0x35   :  { %3056 = vmatpush3.xpose.msk.msra.mxu1 %vm112_vm0, %v61_v23  ;;  %3023 = vmatprep.subr.msk.mxu0 %vm112_vm0, %v44_v24  ;;  %v4034_v23 = vld [vmem:[%s5414_s3 + $0x148] sm:$0xff]  ;;  %v4039_v24 = vld [vmem:[%s5414_s3 + $0x140] sm:$0xff] }
  0x36   :  { %3057 = vmatprep.subr.msk.mxu1 %vm112_vm0, %v76_v25  ;;  %745 = vperm.xlu1 %3430, %v3855_v26   ;;  %v538_v25 = vld [vmem:[%s5416_s0 + $0x8] sm:$0xff] }
  0x37   :  { %740 = vperm.xlu0 %3429, %v3860_v29  }
  0x38   :  { %3024 = vmatpush3.xpose.msk.msra.mxu0 %vm112_vm0, %v28_v30  ;;  %v2856_v30 = vld [vmem:[%s5416_s0 + $0x40] sm:$0xff] }
  0x39   :  { %3058 = vmatpush3.xpose.msk.msra.mxu1 %vm112_vm0, %v60_v31  ;;  %3025 = vmatprep.subr.msk.mxu0 %vm112_vm0, %v43_v32  ;;  %v4056_v31 = vld [vmem:[%s5414_s3 + $0x158] sm:$0xff]  ;;  %v4061_v32 = vld [vmem:[%s5414_s3 + $0x150] sm:$0xff] }
  0x3a   :  { %3059 = vmatprep.subr.msk.mxu1 %vm112_vm0, %v75_v35  ;;  %755 = vperm.xlu1 %3430, %v3883_v36   ;;  %v537_v35 = vld [vmem:[%s5416_s0] sm:$0xff] }
  0x3b   :  { %750 = vperm.xlu0 %3429, %v3888_v37  }
  0x3c   :  { %3026 = vmatpush3.xpose.msk.msra.mxu0 %vm112_vm0, %v27_v38  ;;  %v2855_v38 = vld [vmem:[%s5416_s0 + $0x38] sm:$0xff] }
  0x3d   :  { %3060 = vmatpush3.xpose.msk.msra.mxu1 %vm112_vm0, %v59_v41  ;;  %3027 = vmatprep.subr.msk.mxu0 %vm112_vm0, %v42_v42  ;;  %v4078_v41 = vld [vmem:[%s5414_s3 + $0x168] sm:$0xff]  ;;  %v4083_v42 = vld [vmem:[%s5414_s3 + $0x160] sm:$0xff] }
  0x3e   :  { %3061 = vmatprep.subr.msk.mxu1 %vm112_vm0, %v74_v43  ;;  %765 = vperm.xlu1 %3430, %v3911_v44   ;;  %v4094_v43 = vld [vmem:[%s5414_s3 + $0x178] sm:$0xff] }
  0x3f   :  { %760 = vperm.xlu0 %3429, %v3916_v47  }
  0x40   :  { %3028 = vmatpush3.xpose.msk.msra.mxu0 %vm112_vm0, %v26_v48  ;;  %v4099_v48 = vld [vmem:[%s5414_s3 + $0x170] sm:$0xff] }
  0x41   :  { %3062 = vmatpush3.xpose.msk.msra.mxu1 %vm112_vm0, %v58_v49  ;;  %3207 = vmatprep.subr.msk.mxu0 %vm112_vm0, %v543_v50  ;;  %v474_v49 = vld [vmem:[%s5417_s2 + $0x8] sm:$0xff] }
  0x42   :  { %3317 = vmatprep.subr.msk.mxu1 %vm112_vm0, %v2861_v53  ;;  %775 = vperm.xlu1 %3430, %v3939_v54  }
  0x43   :  { %770 = vperm.xlu0 %3429, %v3944_v56   ;;  %3030 = vmatmul.mubr.msk.f32.vlgmr.msra.gmra.mxu0 %vm112_vm0, %v3724_v55 }
  0x44   :  { %3064 = vmatmul.mubr.msk.f32.vlgmr.msra.gmra.mxu1 %vm112_vm0, %v3724_v55  ;;  %3208 = vmatpush3.xpose.msk.msra.mxu0 %vm112_vm0, %v543_v50  ;;  %v541_v55 = vld [vmem:[%s5416_s0 + $0x20] sm:$0xff]  ;;  %v475_v50 = vld [vmem:[%s5417_s2 + $0x10] sm:$0xff] }
  0x45   :  { %3318 = vmatpush3.xpose.msk.msra.mxu1 %vm112_vm0, %v2861_v53  ;;  %3209 = vmatprep.subr.msk.mxu0 %vm112_vm0, %v542_v57  ;;  %v4116_v53 = vld [vmem:[%s5414_s3 + $0x188] sm:$0xff] }
  0x46   :  { %3319 = vmatprep.subr.msk.mxu1 %vm112_vm0, %v2860_v60  ;;  %785 = vperm.xlu1 %3430, %v3963_v61  }
  0x47   :  { %780 = vperm.xlu0 %3429, %v3968_v62   ;;  %3221 = vmatprep.mubr.msk.f32.mxu0 %vm112_vm0, %v473_v63 }
  0x48   :  { %3331 = vmatprep.mubr.msk.f32.mxu1 %vm112_vm0, %v473_v63  ;;  %3210 = vmatpush3.xpose.msk.msra.mxu0 %vm112_vm0, %v542_v57  ;;  %v4121_v57 = vld [vmem:[%s5414_s3 + $0x180] sm:$0xff] }
  0x49   :  { %3320 = vmatpush3.xpose.msk.msra.mxu1 %vm112_vm0, %v2860_v60  ;;  %3211 = vmatprep.subr.msk.mxu0 %vm112_vm0, %v541_v55  ;;  %v476_v60 = vld [vmem:[%s5417_s2 + $0x18] sm:$0xff]  ;;  %v477_v63 = vld [vmem:[%s5417_s2 + $0x20] sm:$0xff] }
  0x4a   :  { %3321 = vmatprep.subr.msk.mxu1 %vm112_vm0, %v2859_v2  ;;  %795 = vperm.xlu1 %3430, %v3988_v5  }
  0x4b   :  { %790 = vperm.xlu0 %3429, %v3993_v6  }
  0x4c   :  { %3212 = vmatpush3.xpose.msk.msra.mxu0 %vm112_vm0, %v541_v55  ;;  %v4138_v55 = vld [vmem:[%s5414_s3 + $0x198] sm:$0xff] }
  0x4d   :  { %3322 = vmatpush3.xpose.msk.msra.mxu1 %vm112_vm0, %v2859_v2  ;;  %3213 = vmatprep.subr.msk.mxu0 %vm112_vm0, %v540_v7  ;;  %v4143_v2 = vld [vmem:[%s5414_s3 + $0x190] sm:$0xff] }
  0x4e   :  { %3323 = vmatprep.subr.msk.mxu1 %vm112_vm0, %v2858_v12  ;;  %805 = vperm.xlu1 %3430, %v4012_v13  }
  0x4f   :  { %800 = vperm.xlu0 %3429, %v4017_v14  }
  0x50   :  { %3214 = vmatpush3.xpose.msk.msra.mxu0 %vm112_vm0, %v540_v7  ;;  %v478_v7 = vld [vmem:[%s5417_s2 + $0x28] sm:$0xff] }
  0x51   :  { %3324 = vmatpush3.xpose.msk.msra.mxu1 %vm112_vm0, %v2858_v12  ;;  %3215 = vmatprep.subr.msk.mxu0 %vm112_vm0, %v539_v17  ;;  %v479_v12 = vld [vmem:[%s5417_s2 + $0x30] sm:$0xff] }
  0x52   :  { %3325 = vmatprep.subr.msk.mxu1 %vm112_vm0, %v2857_v20  ;;  %815 = vperm.xlu1 %3430, %v4034_v23  }
  0x53   :  { %810 = vperm.xlu0 %3429, %v4039_v24  }
  0x54   :  { %3216 = vmatpush3.xpose.msk.msra.mxu0 %vm112_vm0, %v539_v17  ;;  %v4160_v17 = vld [vmem:[%s5414_s3 + $0x1a8] sm:$0xff] }
  0x55   :  { %3326 = vmatpush3.xpose.msk.msra.mxu1 %vm112_vm0, %v2857_v20  ;;  %3217 = vmatprep.subr.msk.mxu0 %vm112_vm0, %v538_v25  ;;  %v4165_v20 = vld [vmem:[%s5414_s3 + $0x1a0] sm:$0xff] }
  0x56   :  { %3327 = vmatprep.subr.msk.mxu1 %vm112_vm0, %v2856_v30  ;;  %825 = vperm.xlu1 %3430, %v4056_v31  }
  0x57   :  { %820 = vperm.xlu0 %3429, %v4061_v32  }
  0x58   :  { %3218 = vmatpush3.xpose.msk.msra.mxu0 %vm112_vm0, %v538_v25  ;;  %v480_v25 = vld [vmem:[%s5417_s2 + $0x38] sm:$0xff] }
  0x59   :  { %3328 = vmatpush3.xpose.msk.msra.mxu1 %vm112_vm0, %v2856_v30  ;;  %3219 = vmatprep.subr.msk.mxu0 %vm112_vm0, %v537_v35  ;;  %v481_v30 = vld [vmem:[%s5417_s2 + $0x40] sm:$0xff] }
  0x5a   :  { %3329 = vmatprep.subr.msk.mxu1 %vm112_vm0, %v2855_v38  ;;  %835 = vperm.xlu1 %3430, %v4078_v41  }
  0x5b   :  { %830 = vperm.xlu0 %3429, %v4083_v42  }
  0x5c   :  { %3220 = vmatpush3.xpose.msk.msra.mxu0 %vm112_vm0, %v537_v35  ;;  %v4182_v35 = vld [vmem:[%s5414_s3 + $0x1b8] sm:$0xff] }
  0x5d   :  { %3330 = vmatpush3.xpose.msk.msra.mxu1 %vm112_vm0, %v2855_v38  ;;  %v4187_v38 = vld [vmem:[%s5414_s3 + $0x1b0] sm:$0xff] }
  0x5e   :  { %845 = vperm.xlu1 %3430, %v4094_v43  }
  0x5f   :  { %840 = vperm.xlu0 %3429, %v4099_v48   ;;  %3222 = vmatmul.mubr.msk.f32.vlgmr.msra.gmra.mxu0 %vm112_vm0, %v474_v49 }
  0x60   :  { %3332 = vmatmul.mubr.msk.f32.vlgmr.msra.gmra.mxu1 %vm112_vm0, %v474_v49  ;;  %3224 = vmatprep.mubr.msk.f32.mxu0 %vm112_vm0, %v475_v50  ;;  %v482_v49 = vld [vmem:[%s5417_s2 + $0x48] sm:$0xff] }
  0x61   :  { %3334 = vmatprep.mubr.msk.f32.mxu1 %vm112_vm0, %v475_v50  ;;  %v483_v50 = vld [vmem:[%s5417_s2 + $0x50] sm:$0xff] }
  0x62   :  { %855 = vperm.xlu1 %3430, %v4116_v53  }
  0x63   :  { %850 = vperm.xlu0 %3429, %v4121_v57   ;;  %3225 = vmatmul.mubr.msk.f32.gmra.mxu0 %vm112_vm0, %v476_v60 }
  0x64   :  { %3335 = vmatmul.mubr.msk.f32.gmra.mxu1 %vm112_vm0, %v476_v60  ;;  %3227 = vmatprep.mubr.msk.f32.mxu0 %vm112_vm0, %v477_v63  ;;  %v4204_v60 = vld [vmem:[%s5414_s3 + $0x1c8] sm:$0xff] }
  0x65   :  { %3337 = vmatprep.mubr.msk.f32.mxu1 %vm112_vm0, %v477_v63  ;;  %v4209_v63 = vld [vmem:[%s5414_s3 + $0x1c0] sm:$0xff] }
  0x66   :  { %865 = vperm.xlu1 %3430, %v4138_v55   ;;  %5427 = vst [vmem:[#allocation2_spill] sm:$0xff] %v4209_v63 }
  0x67   :  { %860 = vperm.xlu0 %3429, %v4143_v2   ;;  %3228 = vmatmul.mubr.msk.f32.gmra.mxu0 %vm112_vm0, %v478_v7 }
  0x68   :  { %3338 = vmatmul.mubr.msk.f32.gmra.mxu1 %vm112_vm0, %v478_v7  ;;  %3230 = vmatprep.mubr.msk.f32.mxu0 %vm112_vm0, %v479_v12  ;;  %v484_v7 = vld [vmem:[%s5417_s2 + $0x58] sm:$0xff] }
  0x69   :  { %3340 = vmatprep.mubr.msk.f32.mxu1 %vm112_vm0, %v479_v12  ;;  %v485_v12 = vld [vmem:[%s5417_s2 + $0x60] sm:$0xff] }
  0x6a   :  { %875 = vperm.xlu1 %3430, %v4160_v17  }
  0x6b   :  { %870 = vperm.xlu0 %3429, %v4165_v20   ;;  %3231 = vmatmul.mubr.msk.f32.gmra.mxu0 %vm112_vm0, %v480_v25 }
  0x6c   :  { %3341 = vmatmul.mubr.msk.f32.gmra.mxu1 %vm112_vm0, %v480_v25  ;;  %3233 = vmatprep.mubr.msk.f32.mxu0 %vm112_vm0, %v481_v30  ;;  %v4226_v25 = vld [vmem:[%s5414_s3 + $0x1d8] sm:$0xff] }
  0x6d   :  { %3343 = vmatprep.mubr.msk.f32.mxu1 %vm112_vm0, %v481_v30  ;;  %5428 = vst [vmem:[#allocation3_spill] sm:$0xff] %v4226_v25  ;;  %v4231_v30 = vld [vmem:[%s5414_s3 + $0x1d0] sm:$0xff] }
  0x6e   :  { %885 = vperm.xlu1 %3430, %v4182_v35   ;;  %5429 = vst [vmem:[#allocation4_spill] sm:$0xff] %v4231_v30 }
  0x6f   :  { %880 = vperm.xlu0 %3429, %v4187_v38   ;;  %3234 = vmatmul.mubr.msk.f32.gmra.mxu0 %vm112_vm0, %v482_v49 }
  0x70   :  { %3344 = vmatmul.mubr.msk.f32.gmra.mxu1 %vm112_vm0, %v482_v49  ;;  %3236 = vmatprep.mubr.msk.f32.mxu0 %vm112_vm0, %v483_v50  ;;  %v486_v49 = vld [vmem:[%s5417_s2 + $0x68] sm:$0xff] }
  0x71   :  { %3346 = vmatprep.mubr.msk.f32.mxu1 %vm112_vm0, %v483_v50  ;;  %v487_v50 = vld [vmem:[%s5417_s2 + $0x70] sm:$0xff] }
  0x72   :  { %895 = vperm.xlu1 %3430, %v4204_v60  }
  0x73   :  { %890 = vperm.xlu0 %3429, %v4209_v63   ;;  %3237 = vmatmul.mubr.msk.f32.gmra.mxu0 %vm112_vm0, %v484_v7  ;;  %v491_v63 = vld [vmem:[%s5417_s2 + $0x90] sm:$0xff] }
  0x74   :  { %3347 = vmatmul.mubr.msk.f32.gmra.mxu1 %vm112_vm0, %v484_v7  ;;  %3239 = vmatprep.mubr.msk.f32.mxu0 %vm112_vm0, %v485_v12  ;;  %v4248_v7 = vld [vmem:[%s5414_s3 + $0x1e8] sm:$0xff] }
  0x75   :  { %3349 = vmatprep.mubr.msk.f32.mxu1 %vm112_vm0, %v485_v12  ;;  %5430 = vst [vmem:[#allocation5_spill] sm:$0xff] %v4248_v7  ;;  %v4253_v12 = vld [vmem:[%s5414_s3 + $0x1e0] sm:$0xff] }
  0x76   :  { %905 = vperm.xlu1 %3430, %v4226_v25   ;;  %5431 = vst [vmem:[#allocation6_spill] sm:$0xff] %v4253_v12  ;;  %v4275_v25 = vld [vmem:[%s5414_s3 + $0x1f0] sm:$0xff] }
  0x77   :  { %900 = vperm.xlu0 %3429, %v4231_v30   ;;  %3240 = vmatmul.mubr.msk.f32.gmra.mxu0 %vm112_vm0, %v486_v49  ;;  %v488_v30 = vld [vmem:[%s5417_s2 + $0x78] sm:$0xff]  ;;  %5432 = vst [vmem:[#allocation7_spill] sm:$0xff] %v4275_v25 }
  0x78   :  { %3350 = vmatmul.mubr.msk.f32.gmra.mxu1 %vm112_vm0, %v486_v49  ;;  %3242 = vmatprep.mubr.msk.f32.mxu0 %vm112_vm0, %v487_v50  ;;  %v489_v49 = vld [vmem:[%s5417_s2 + $0x80] sm:$0xff] }
  0x79   :  { %3352 = vmatprep.mubr.msk.f32.mxu1 %vm112_vm0, %v487_v50  ;;  %v4270_v50 = vld [vmem:[%s5414_s3 + $0x1f8] sm:$0xff] }
  0x7a   :  { %915 = vperm.xlu1 %3430, %v4248_v7  }
  0x7b   :  { %910 = vperm.xlu0 %3429, %v4253_v12   ;;  %3243 = vmatmul.mubr.msk.f32.gmra.mxu0 %vm112_vm0, %v488_v30  ;;  %v490_v12 = vld [vmem:[%s5417_s2 + $0x88] sm:$0xff] }
  0x7c   :  { %3353 = vmatmul.mubr.msk.f32.gmra.mxu1 %vm112_vm0, %v488_v30  ;;  %3245 = vmatprep.mubr.msk.f32.mxu0 %vm112_vm0, %v489_v49 }
  0x7d   :  { %3355 = vmatprep.mubr.msk.f32.mxu1 %vm112_vm0, %v489_v49  ;;  %v4282_v7 = vpop.permute.xlu1 %620  ;;  %v492_v49 = vld [vmem:[%s5417_s2 + $0x98] sm:$0xff] }
  0x7e   :  { %5433 = vst [vmem:[#allocation8_spill] sm:$0xff] %v4282_v7  ;;  %v4284_v30 = vpop.permute.xlu0 %610  ;;  %925 = vperm.xlu1 %3430, %v4270_v50  }
  0x7f   :  { %5434 = vst [vmem:[#allocation9_spill] sm:$0xff] %v4284_v30  ;;  %920 = vperm.xlu0 %3429, %v4275_v25   ;;  %3246 = vmatmul.mubr.msk.f32.gmra.mxu0 %vm112_vm0, %v490_v12  ;;  %v493_v25 = vld [vmem:[%s5417_s2 + $0xa0] sm:$0xff] }
  0x80   :  { %3356 = vmatmul.mubr.msk.f32.gmra.mxu1 %vm112_vm0, %v490_v12  ;;  %3248 = vmatprep.mubr.msk.f32.mxu0 %vm112_vm0, %v491_v63 }
  0x81   :  { %3358 = vmatprep.mubr.msk.f32.mxu1 %vm112_vm0, %v491_v63  ;;  %v4298_v7 = vpop.permute.xlu1 %625  ;;  %v494_v63 = vld [vmem:[%s5417_s2 + $0xa8] sm:$0xff] }
  0x82   :  { %5435 = vst [vmem:[#allocation10_spill] sm:$0xff] %v4298_v7  ;;  %v4300_v30 = vpop.permute.xlu0 %615  ;;  %1734 = vperm.xlu1 %3430, %v3515_v10   ;;  %v496_v10 = vld [vmem:[%s5417_s2 + $0xb8] sm:$0xff] }
  0x83   :  { %1729 = vperm.xlu0 %3429, %v3489_v4   ;;  %3249 = vmatmul.mubr.msk.f32.gmra.mxu0 %vm112_vm0, %v492_v49  ;;  %v495_v4 = vld [vmem:[%s5417_s2 + $0xb0] sm:$0xff] }
  0x84   :  { %3359 = vmatmul.mubr.msk.f32.gmra.mxu1 %vm112_vm0, %v492_v49  ;;  %3251 = vmatprep.mubr.msk.f32.mxu0 %vm112_vm0, %v493_v25 }
  0x85   :  { %3361 = vmatprep.mubr.msk.f32.mxu1 %vm112_vm0, %v493_v25  ;;  %v4314_v12 = vpop.permute.xlu1 %635 }
  0x86   :  { %v4316_v7 = vpop.permute.xlu0 %630  ;;  %1744 = vperm.xlu1 %3430, %v3510_v9   ;;  %v498_v9 = vld [vmem:[%s5417_s2 + $0xc8] sm:$0xff] }
  0x87   :  { %1739 = vperm.xlu0 %3429, %v3482_v3   ;;  %3252 = vmatmul.mubr.msk.f32.gmra.mxu0 %vm112_vm0, %v494_v63  ;;  %v497_v3 = vld [vmem:[%s5417_s2 + $0xc0] sm:$0xff] }
  0x88   :  { %3362 = vmatmul.mubr.msk.f32.gmra.mxu1 %vm112_vm0, %v494_v63  ;;  %3254 = vmatprep.mubr.msk.f32.mxu0 %vm112_vm0, %v495_v4 }
  0x89   :  { %3364 = vmatprep.mubr.msk.f32.mxu1 %vm112_vm0, %v495_v4  ;;  %v4330_v25 = vpop.permute.xlu1 %645 }
  0x8a   :  { %v4332_v49 = vpop.permute.xlu0 %640  ;;  %1754 = vperm.xlu1 %3430, %v3538_v15   ;;  %v499_v15 = vld [vmem:[%s5417_s2 + $0xd0] sm:$0xff] }
  0x8b   :  { %1749 = vperm.xlu0 %3429, %v3543_v16   ;;  %3255 = vmatmul.mubr.msk.f32.gmra.mxu0 %vm112_vm0, %v496_v10  ;;  %v500_v16 = vld [vmem:[%s5417_s2 + $0xd8] sm:$0xff] }
  0x8c   :  { %3365 = vmatmul.mubr.msk.f32.gmra.mxu1 %vm112_vm0, %v496_v10  ;;  %3257 = vmatprep.mubr.msk.f32.mxu0 %vm112_vm0, %v497_v3 }
  0x8d   :  { %3367 = vmatprep.mubr.msk.f32.mxu1 %vm112_vm0, %v497_v3  ;;  %v4346_v63 = vpop.permute.xlu1 %655 }
  0x8e   :  { %v4348_v4 = vpop.permute.xlu0 %650  ;;  %1764 = vperm.xlu1 %3430, %v3566_v21   ;;  %v501_v21 = vld [vmem:[%s5417_s2 + $0xe0] sm:$0xff] }
  0x8f   :  { %1759 = vperm.xlu0 %3429, %v3571_v22   ;;  %3258 = vmatmul.mubr.msk.f32.gmra.mxu0 %vm112_vm0, %v498_v9  ;;  %v502_v22 = vld [vmem:[%s5417_s2 + $0xe8] sm:$0xff] }
  0x90   :  { %3368 = vmatmul.mubr.msk.f32.gmra.mxu1 %vm112_vm0, %v498_v9  ;;  %3260 = vmatprep.mubr.msk.f32.mxu0 %vm112_vm0, %v499_v15 }
  0x91   :  { %3370 = vmatprep.mubr.msk.f32.mxu1 %vm112_vm0, %v499_v15  ;;  %v4362_v10 = vpop.permute.xlu1 %665 }
  0x92   :  { %v4364_v3 = vpop.permute.xlu0 %660  ;;  %1774 = vperm.xlu1 %3430, %v3594_v27   ;;  %v503_v27 = vld [vmem:[%s5417_s2 + $0xf0] sm:$0xff] }
  0x93   :  { %1769 = vperm.xlu0 %3429, %v3599_v28   ;;  %3261 = vmatmul.mubr.msk.f32.gmra.mxu0 %vm112_vm0, %v500_v16  ;;  %v504_v28 = vld [vmem:[%s5417_s2 + $0xf8] sm:$0xff] }
  0x94   :  { %3371 = vmatmul.mubr.msk.f32.gmra.mxu1 %vm112_vm0, %v500_v16  ;;  %3263 = vmatprep.mubr.msk.f32.mxu0 %vm112_vm0, %v501_v21 }
  0x95   :  { %3373 = vmatprep.mubr.msk.f32.mxu1 %vm112_vm0, %v501_v21  ;;  %v4378_v9 = vpop.permute.xlu1 %675 }
  0x96   :  { %v4380_v15 = vpop.permute.xlu0 %670  ;;  %1784 = vperm.xlu1 %3430, %v3622_v33   ;;  %v505_v33 = vld [vmem:[%s5417_s2 + $0x100] sm:$0xff] }
  0x97   :  { %1779 = vperm.xlu0 %3429, %v3627_v34   ;;  %3264 = vmatmul.mubr.msk.f32.gmra.mxu0 %vm112_vm0, %v502_v22  ;;  %v506_v34 = vld [vmem:[%s5417_s2 + $0x108] sm:$0xff] }
  0x98   :  { %3374 = vmatmul.mubr.msk.f32.gmra.mxu1 %vm112_vm0, %v502_v22  ;;  %3266 = vmatprep.mubr.msk.f32.mxu0 %vm112_vm0, %v503_v27 }
  0x99   :  { %3376 = vmatprep.mubr.msk.f32.mxu1 %vm112_vm0, %v503_v27  ;;  %v4394_v16 = vpop.permute.xlu1 %685 }
  0x9a   :  { %v4396_v21 = vpop.permute.xlu0 %680  ;;  %1794 = vperm.xlu1 %3430, %v3650_v39   ;;  %v507_v39 = vld [vmem:[%s5417_s2 + $0x110] sm:$0xff] }
  0x9b   :  { %1789 = vperm.xlu0 %3429, %v3655_v40   ;;  %3267 = vmatmul.mubr.msk.f32.gmra.mxu0 %vm112_vm0, %v504_v28  ;;  %v508_v40 = vld [vmem:[%s5417_s2 + $0x118] sm:$0xff] }
  0x9c   :  { %3377 = vmatmul.mubr.msk.f32.gmra.mxu1 %vm112_vm0, %v504_v28  ;;  %3269 = vmatprep.mubr.msk.f32.mxu0 %vm112_vm0, %v505_v33 }
  0x9d   :  { %3379 = vmatprep.mubr.msk.f32.mxu1 %vm112_vm0, %v505_v33  ;;  %v4410_v22 = vpop.permute.xlu1 %695 }
  0x9e   :  { %v4412_v27 = vpop.permute.xlu0 %690  ;;  %1804 = vperm.xlu1 %3430, %v3678_v45   ;;  %v509_v45 = vld [vmem:[%s5417_s2 + $0x120] sm:$0xff] }
  0x9f   :  { %1799 = vperm.xlu0 %3429, %v3683_v46   ;;  %3270 = vmatmul.mubr.msk.f32.gmra.mxu0 %vm112_vm0, %v506_v34  ;;  %v510_v46 = vld [vmem:[%s5417_s2 + $0x128] sm:$0xff] }
  0xa0   :  { %3380 = vmatmul.mubr.msk.f32.gmra.mxu1 %vm112_vm0, %v506_v34  ;;  %3272 = vmatprep.mubr.msk.f32.mxu0 %vm112_vm0, %v507_v39 }
  0xa1   :  { %3382 = vmatprep.mubr.msk.f32.mxu1 %vm112_vm0, %v507_v39  ;;  %v4426_v28 = vpop.permute.xlu1 %705 }
  0xa2   :  { %v4428_v33 = vpop.permute.xlu0 %700  ;;  %1814 = vperm.xlu1 %3430, %v3706_v51   ;;  %v511_v51 = vld [vmem:[%s5417_s2 + $0x130] sm:$0xff] }
  0xa3   :  { %1809 = vperm.xlu0 %3429, %v3711_v52   ;;  %3273 = vmatmul.mubr.msk.f32.gmra.mxu0 %vm112_vm0, %v508_v40  ;;  %v512_v52 = vld [vmem:[%s5417_s2 + $0x138] sm:$0xff] }
  0xa4   :  { %3383 = vmatmul.mubr.msk.f32.gmra.mxu1 %vm112_vm0, %v508_v40  ;;  %3275 = vmatprep.mubr.msk.f32.mxu0 %vm112_vm0, %v509_v45 }
  0xa5   :  { %3385 = vmatprep.mubr.msk.f32.mxu1 %vm112_vm0, %v509_v45  ;;  %v4442_v34 = vpop.permute.xlu1 %715 }
  0xa6   :  { %v4444_v39 = vpop.permute.xlu0 %710  ;;  %1824 = vperm.xlu1 %3430, %v3743_v58   ;;  %v513_v58 = vld [vmem:[%s5417_s2 + $0x140] sm:$0xff] }
  0xa7   :  { %1819 = vperm.xlu0 %3429, %v3748_v59   ;;  %3276 = vmatmul.mubr.msk.f32.gmra.mxu0 %vm112_vm0, %v510_v46  ;;  %v514_v59 = vld [vmem:[%s5417_s2 + $0x148] sm:$0xff] }
  0xa8   :  { %3386 = vmatmul.mubr.msk.f32.gmra.mxu1 %vm112_vm0, %v510_v46  ;;  %3278 = vmatprep.mubr.msk.f32.mxu0 %vm112_vm0, %v511_v51 }
  0xa9   :  { %3388 = vmatprep.mubr.msk.f32.mxu1 %vm112_vm0, %v511_v51  ;;  %v4458_v40 = vpop.permute.xlu1 %725 }
  0xaa   :  { %v4460_v45 = vpop.permute.xlu0 %720  ;;  %1834 = vperm.xlu1 %3430, %v3771_v0   ;;  %v515_v0 = vld [vmem:[%s5417_s2 + $0x150] sm:$0xff] }
  0xab   :  { %1829 = vperm.xlu0 %3429, %v3776_v1   ;;  %3279 = vmatmul.mubr.msk.f32.gmra.mxu0 %vm112_vm0, %v512_v52  ;;  %v516_v1 = vld [vmem:[%s5417_s2 + $0x158] sm:$0xff] }
  0xac   :  { %3389 = vmatmul.mubr.msk.f32.gmra.mxu1 %vm112_vm0, %v512_v52  ;;  %3281 = vmatprep.mubr.msk.f32.mxu0 %vm112_vm0, %v513_v58 }
  0xad   :  { %3391 = vmatprep.mubr.msk.f32.mxu1 %vm112_vm0, %v513_v58  ;;  %v4474_v46 = vpop.permute.xlu1 %735 }
  0xae   :  { %v4476_v51 = vpop.permute.xlu0 %730  ;;  %1844 = vperm.xlu1 %3430, %v3799_v8   ;;  %v517_v8 = vld [vmem:[%s5417_s2 + $0x160] sm:$0xff] }
  0xaf   :  { %1839 = vperm.xlu0 %3429, %v3804_v11   ;;  %3282 = vmatmul.mubr.msk.f32.gmra.mxu0 %vm112_vm0, %v514_v59  ;;  %v518_v11 = vld [vmem:[%s5417_s2 + $0x168] sm:$0xff] }
  0xb0   :  { %3392 = vmatmul.mubr.msk.f32.gmra.mxu1 %vm112_vm0, %v514_v59  ;;  %3284 = vmatprep.mubr.msk.f32.mxu0 %vm112_vm0, %v515_v0 }
  0xb1   :  { %3394 = vmatprep.mubr.msk.f32.mxu1 %vm112_vm0, %v515_v0  ;;  %v4490_v52 = vpop.permute.xlu1 %745 }
  0xb2   :  { %v4492_v58 = vpop.permute.xlu0 %740  ;;  %1854 = vperm.xlu1 %3430, %v3827_v18   ;;  %v519_v18 = vld [vmem:[%s5417_s2 + $0x170] sm:$0xff] }
  0xb3   :  { %1849 = vperm.xlu0 %3429, %v3832_v19   ;;  %3285 = vmatmul.mubr.msk.f32.gmra.mxu0 %vm112_vm0, %v516_v1  ;;  %v520_v19 = vld [vmem:[%s5417_s2 + $0x178] sm:$0xff] }
  0xb4   :  { %3395 = vmatmul.mubr.msk.f32.gmra.mxu1 %vm112_vm0, %v516_v1  ;;  %3287 = vmatprep.mubr.msk.f32.mxu0 %vm112_vm0, %v517_v8 }
  0xb5   :  { %3397 = vmatprep.mubr.msk.f32.mxu1 %vm112_vm0, %v517_v8  ;;  %v4506_v59 = vpop.permute.xlu1 %755 }
  0xb6   :  { %v4508_v0 = vpop.permute.xlu0 %750  ;;  %1864 = vperm.xlu1 %3430, %v3855_v26   ;;  %v521_v26 = vld [vmem:[%s5417_s2 + $0x180] sm:$0xff] }
  0xb7   :  { %1859 = vperm.xlu0 %3429, %v3860_v29   ;;  %3288 = vmatmul.mubr.msk.f32.gmra.mxu0 %vm112_vm0, %v518_v11  ;;  %v522_v29 = vld [vmem:[%s5417_s2 + $0x188] sm:$0xff] }
  0xb8   :  { %3398 = vmatmul.mubr.msk.f32.gmra.mxu1 %vm112_vm0, %v518_v11  ;;  %3290 = vmatprep.mubr.msk.f32.mxu0 %vm112_vm0, %v519_v18 }
  0xb9   :  { %3400 = vmatprep.mubr.msk.f32.mxu1 %vm112_vm0, %v519_v18  ;;  %v4522_v1 = vpop.permute.xlu1 %765 }
  0xba   :  { %v4524_v8 = vpop.permute.xlu0 %760  ;;  %1874 = vperm.xlu1 %3430, %v3883_v36   ;;  %v523_v36 = vld [vmem:[%s5417_s2 + $0x190] sm:$0xff] }
  0xbb   :  { %1869 = vperm.xlu0 %3429, %v3888_v37   ;;  %3291 = vmatmul.mubr.msk.f32.gmra.mxu0 %vm112_vm0, %v520_v19  ;;  %v524_v37 = vld [vmem:[%s5417_s2 + $0x198] sm:$0xff] }
  0xbc   :  { %3401 = vmatmul.mubr.msk.f32.gmra.mxu1 %vm112_vm0, %v520_v19  ;;  %3293 = vmatprep.mubr.msk.f32.mxu0 %vm112_vm0, %v521_v26 }
  0xbd   :  { %3403 = vmatprep.mubr.msk.f32.mxu1 %vm112_vm0, %v521_v26  ;;  %v4538_v11 = vpop.permute.xlu1 %775 }
  0xbe   :  { %v4540_v18 = vpop.permute.xlu0 %770  ;;  %1884 = vperm.xlu1 %3430, %v3911_v44   ;;  %v525_v44 = vld [vmem:[%s5417_s2 + $0x1a0] sm:$0xff] }
  0xbf   :  { %1879 = vperm.xlu0 %3429, %v3916_v47   ;;  %3294 = vmatmul.mubr.msk.f32.gmra.mxu0 %vm112_vm0, %v522_v29  ;;  %v526_v47 = vld [vmem:[%s5417_s2 + $0x1a8] sm:$0xff] }
  0xc0   :  { %3404 = vmatmul.mubr.msk.f32.gmra.mxu1 %vm112_vm0, %v522_v29  ;;  %3296 = vmatprep.mubr.msk.f32.mxu0 %vm112_vm0, %v523_v36 }
  0xc1   :  { %3406 = vmatprep.mubr.msk.f32.mxu1 %vm112_vm0, %v523_v36  ;;  %v4554_v19 = vpop.permute.xlu1 %785 }
  0xc2   :  { %v4556_v26 = vpop.permute.xlu0 %780  ;;  %1894 = vperm.xlu1 %3430, %v3939_v54   ;;  %v527_v54 = vld [vmem:[%s5417_s2 + $0x1b0] sm:$0xff] }
  0xc3   :  { %1889 = vperm.xlu0 %3429, %v3944_v56   ;;  %3297 = vmatmul.mubr.msk.f32.gmra.mxu0 %vm112_vm0, %v524_v37  ;;  %v528_v56 = vld [vmem:[%s5417_s2 + $0x1b8] sm:$0xff] }
  0xc4   :  { %3407 = vmatmul.mubr.msk.f32.gmra.mxu1 %vm112_vm0, %v524_v37  ;;  %3299 = vmatprep.mubr.msk.f32.mxu0 %vm112_vm0, %v525_v44 }
  0xc5   :  { %3409 = vmatprep.mubr.msk.f32.mxu1 %vm112_vm0, %v525_v44  ;;  %v4570_v29 = vpop.permute.xlu1 %795 }
  0xc6   :  { %5436 = vst [vmem:[#allocation11_spill] sm:$0xff] %v4570_v29  ;;  %v4572_v36 = vpop.permute.xlu0 %790  ;;  %1904 = vperm.xlu1 %3430, %v3963_v61   ;;  %v529_v61 = vld [vmem:[%s5417_s2 + $0x1c0] sm:$0xff] }
  0xc7   :  { %5437 = vst [vmem:[#allocation12_spill] sm:$0xff] %v4572_v36  ;;  %1899 = vperm.xlu0 %3429, %v3968_v62   ;;  %3300 = vmatmul.mubr.msk.f32.gmra.mxu0 %vm112_vm0, %v526_v47  ;;  %v530_v62 = vld [vmem:[%s5417_s2 + $0x1c8] sm:$0xff] }
  0xc8   :  { %3410 = vmatmul.mubr.msk.f32.gmra.mxu1 %vm112_vm0, %v526_v47  ;;  %3302 = vmatprep.mubr.msk.f32.mxu0 %vm112_vm0, %v527_v54 }
  0xc9   :  { %3412 = vmatprep.mubr.msk.f32.mxu1 %vm112_vm0, %v527_v54  ;;  %v4586_v37 = vpop.permute.xlu1 %805 }
  0xca   :  { %5438 = vst [vmem:[#allocation13_spill] sm:$0xff] %v4586_v37  ;;  %v4588_v44 = vpop.permute.xlu0 %800  ;;  %1914 = vperm.xlu1 %3430, %v3988_v5   ;;  %v531_v5 = vld [vmem:[%s5417_s2 + $0x1d0] sm:$0xff] }
  0xcb   :  { %5439 = vst [vmem:[#allocation14_spill] sm:$0xff] %v4588_v44  ;;  %1909 = vperm.xlu0 %3429, %v3993_v6   ;;  %3303 = vmatmul.mubr.msk.f32.gmra.mxu0 %vm112_vm0, %v528_v56  ;;  %v532_v6 = vld [vmem:[%s5417_s2 + $0x1d8] sm:$0xff] }
  0xcc   :  { %3413 = vmatmul.mubr.msk.f32.gmra.mxu1 %vm112_vm0, %v528_v56  ;;  %3305 = vmatprep.mubr.msk.f32.mxu0 %vm112_vm0, %v529_v61 }
  0xcd   :  { %3415 = vmatprep.mubr.msk.f32.mxu1 %vm112_vm0, %v529_v61  ;;  %v4602_v47 = vpop.permute.xlu1 %815 }
  0xce   :  { %5440 = vst [vmem:[#allocation15_spill] sm:$0xff] %v4602_v47  ;;  %v4604_v54 = vpop.permute.xlu0 %810  ;;  %1924 = vperm.xlu1 %3430, %v4012_v13   ;;  %v533_v13 = vld [vmem:[%s5417_s2 + $0x1e0] sm:$0xff] }
  0xcf   :  { %5441 = vst [vmem:[#allocation16_spill] sm:$0xff] %v4604_v54  ;;  %1919 = vperm.xlu0 %3429, %v4017_v14   ;;  %3306 = vmatmul.mubr.msk.f32.gmra.mxu0 %vm112_vm0, %v530_v62  ;;  %v534_v14 = vld [vmem:[%s5417_s2 + $0x1e8] sm:$0xff] }
  0xd0   :  { %3416 = vmatmul.mubr.msk.f32.gmra.mxu1 %vm112_vm0, %v530_v62  ;;  %3308 = vmatprep.mubr.msk.f32.mxu0 %vm112_vm0, %v531_v5 }
  0xd1   :  { %3418 = vmatprep.mubr.msk.f32.mxu1 %vm112_vm0, %v531_v5  ;;  %v4618_v56 = vpop.permute.xlu1 %825 }
  0xd2   :  { %5442 = vst [vmem:[#allocation17_spill] sm:$0xff] %v4618_v56  ;;  %v4620_v61 = vpop.permute.xlu0 %820  ;;  %1934 = vperm.xlu1 %3430, %v4034_v23   ;;  %v535_v23 = vld [vmem:[%s5417_s2 + $0x1f0] sm:$0xff] }
  0xd3   :  { %5443 = vst [vmem:[#allocation18_spill] sm:$0xff] %v4620_v61  ;;  %1929 = vperm.xlu0 %3429, %v4039_v24   ;;  %3309 = vmatmul.mubr.msk.f32.gmra.mxu0 %vm112_vm0, %v532_v6  ;;  %v536_v24 = vld [vmem:[%s5417_s2 + $0x1f8] sm:$0xff] }
  0xd4   :  { %3419 = vmatmul.mubr.msk.f32.gmra.mxu1 %vm112_vm0, %v532_v6  ;;  %3311 = vmatprep.mubr.msk.f32.mxu0 %vm112_vm0, %v533_v13 }
  0xd5   :  { %3421 = vmatprep.mubr.msk.f32.mxu1 %vm112_vm0, %v533_v13  ;;  %v4634_v62 = vpop.permute.xlu1 %835 }
  0xd6   :  { %5444 = vst [vmem:[#allocation19_spill] sm:$0xff] %v4634_v62  ;;  %v4636_v5 = vpop.permute.xlu0 %830  ;;  %1944 = vperm.xlu1 %3430, %v4056_v31  }
  0xd7   :  { %5445 = vst [vmem:[#allocation20_spill] sm:$0xff] %v4636_v5  ;;  %1939 = vperm.xlu0 %3429, %v4061_v32   ;;  %3312 = vmatmul.mubr.msk.f32.gmra.mxu0 %vm112_vm0, %v534_v14 }
  0xd8   :  { %3422 = vmatmul.mubr.msk.f32.gmra.mxu1 %vm112_vm0, %v534_v14  ;;  %3314 = vmatprep.mubr.msk.f32.mxu0 %vm112_vm0, %v535_v23 }
  0xd9   :  { %3424 = vmatprep.mubr.msk.f32.mxu1 %vm112_vm0, %v535_v23  ;;  %v4650_v6 = vpop.permute.xlu1 %845 }
  0xda   :  { %5446 = vst [vmem:[#allocation21_spill] sm:$0xff] %v4650_v6  ;;  %v4652_v13 = vpop.permute.xlu0 %840  ;;  %1954 = vperm.xlu1 %3430, %v4078_v41  }
  0xdb   :  { %5447 = vst [vmem:[#allocation22_spill] sm:$0xff] %v4652_v13  ;;  %1949 = vperm.xlu0 %3429, %v4083_v42   ;;  %3315 = vmatmul.mubr.msk.f32.gmra.mxu0 %vm112_vm0, %v536_v24 }
  0xdc   :  { %3425 = vmatmul.mubr.msk.f32.gmra.mxu1 %vm112_vm0, %v536_v24 }
  0xdd   :  { %v4658_v31 = vpop.permute.xlu1 %855 }
  0xde   :  { %5448 = vst [vmem:[#allocation23_spill] sm:$0xff] %v4658_v31  ;;  %v4660_v32 = vpop.permute.xlu0 %850  ;;  %1964 = vperm.xlu1 %3430, %v4094_v43  }
  0xdf   :  { %5449 = vst [vmem:[#allocation24_spill] sm:$0xff] %v4660_v32  ;;  %1959 = vperm.xlu0 %3429, %v4099_v48  }
  0xe1   :  { %v4664_v14 = vpop.permute.xlu1 %865 }
  0xe2   :  { %5450 = vst [vmem:[#allocation25_spill] sm:$0xff] %v4664_v14  ;;  %v4666_v23 = vpop.permute.xlu0 %860  ;;  %1974 = vperm.xlu1 %3430, %v4116_v53  }
  0xe3   :  { %5451 = vst [vmem:[#allocation26_spill] sm:$0xff] %v4666_v23  ;;  %1969 = vperm.xlu0 %3429, %v4121_v57  }
  0xe5   :  { %v4670_v41 = vpop.permute.xlu1 %875 }
  0xe6   :  { %5452 = vst [vmem:[#allocation27_spill] sm:$0xff] %v4670_v41  ;;  %v4672_v42 = vpop.permute.xlu0 %870  ;;  %1984 = vperm.xlu1 %3430, %v4138_v55  }
  0xe7   :  { %5453 = vst [vmem:[#allocation28_spill] sm:$0xff] %v4672_v42  ;;  %1979 = vperm.xlu0 %3429, %v4143_v2   ;;  %v5460_v2 = vld [vmem:[#allocation2_spill] sm:$0xff] }
  0xe9   :  { %v4676_v24 = vpop.permute.xlu1 %885 }
  0xea   :  { %5454 = vst [vmem:[#allocation29_spill] sm:$0xff] %v4676_v24  ;;  %v4678_v43 = vpop.permute.xlu0 %880  ;;  %1994 = vperm.xlu1 %3430, %v4160_v17  }
  0xeb   :  { %5455 = vst [vmem:[#allocation30_spill] sm:$0xff] %v4678_v43  ;;  %1989 = vperm.xlu0 %3429, %v4165_v20   ;;  %v92_v43 = vlaneseq }
  0xed   :  { %v4682_v48 = vpop.permute.xlu1 %895 }
  0xee   :  { %5456 = vst [vmem:[#allocation31_spill] sm:$0xff] %v4682_v48  ;;  %v4684_v53 = vpop.permute.xlu0 %890  ;;  %2004 = vperm.xlu1 %3430, %v4182_v35   ;;  %v5463_v48 = vld [vmem:[#allocation3_spill] sm:$0xff]  ;;  %v93_v35 = vshrl.u32 %v92_v43, 7 }
  0xef   :  { %5457 = vst [vmem:[#allocation32_spill] sm:$0xff] %v4684_v53  ;;  %1999 = vperm.xlu0 %3429, %v4187_v38   ;;  %v5464_v53 = vld [vmem:[#allocation4_spill] sm:$0xff] }
  0xf0   :  { %v98_v43 = vsub.s32 1, %v93_v35 }
  0xf1   :  { %v4688_v57 = vpop.permute.xlu1 %905 }
  0xf2   :  { %5458 = vst [vmem:[#allocation33_spill] sm:$0xff] %v4688_v57  ;;  %v4690_v55 = vpop.permute.xlu0 %900  ;;  %2014 = vperm.xlu1 %3430, %v4204_v60   ;;  %v5467_v57 = vld [vmem:[#allocation5_spill] sm:$0xff]  ;;  %v94_v60 = vsub.s32 0, %v93_v35 }
  0xf3   :  { %5459 = vst [vmem:[#allocation34_spill] sm:$0xff] %v4690_v55  ;;  %2009 = vperm.xlu0 %3429, %v5460_v2   ;;  %v5468_v55 = vld [vmem:[#allocation6_spill] sm:$0xff]  ;;  %v102_v2 = vsub.s32 2, %v93_v35 }
  0xf5   :  { %v4694_v17 = vpop.permute.xlu1 %915 }
  0xf6   :  { %5461 = vst [vmem:[#allocation2_spill] sm:$0xff] %v4694_v17  ;;  %v4696_v20 = vpop.permute.xlu0 %910  ;;  %2024 = vperm.xlu1 %3430, %v5463_v48   ;;  %v5469_v48 = vld [vmem:[#allocation7_spill] sm:$0xff] }
  0xf7   :  { %5462 = vst [vmem:[#allocation35_spill] sm:$0xff] %v4696_v20  ;;  %2019 = vperm.xlu0 %3429, %v5464_v53   ;;  %v90_v20 = vld [vmem:[%s5418_s5] sm:$0xf]  ;;  %v3432_v53 = vmov 1983009808  }
  0xf8   :  { %v95_v17 = vrot.slane %v90_v20, %v94_v60  ;;  %v99_v14 = vrot.slane %v90_v20, %v98_v43 }
  0xf9   :  { %v4700_v24 = vpop.permute.xlu1 %925 }
  0xfa   :  { %5465 = vst [vmem:[#allocation3_spill] sm:$0xff] %v4700_v24  ;;  %v4702_v38 = vpop.permute.xlu0 %920  ;;  %2034 = vperm.xlu1 %3430, %v5467_v57   ;;  %v457_v24 = vunpack.c.l.s4 %v3432_v53  ;;  %v103_v57 = vrot.slane %v90_v20, %v102_v2 }
  0xfb   :  { %5466 = vst [vmem:[#allocation4_spill] sm:$0xff] %v4702_v38  ;;  %2029 = vperm.xlu0 %3429, %v5468_v55   ;;  %v106_v38 = vsub.s32 3, %v93_v35 }
  0xfc   :  { %v458_v32 = vunpack.c.0.s8 %v457_v24 }
  0xfd   :  { %v1735_v42 = vpop.permute.xlu1 %1734  ;;  %v107_v31 = vrot.slane %v90_v20, %v106_v38 }
  0xfe   :  { %v1730_v41 = vpop.permute.xlu0 %1729  ;;  %2044 = vperm.xlu1 %3430, %v4270_v50   ;;  %v461_v54 = vsub.s32 %v458_v32, %v93_v35 }
  0xff   :  { %2039 = vperm.xlu0 %3429, %v5469_v48  }
 0x101   :  { %v1745_v23 = vpop.permute.xlu1 %1744 }
 0x102   :  { %v1740_v55 = vpop.permute.xlu0 %1739 }
 0x103   :  { %v374_v13 = vpop.f32.mrf.mxu0 }
 0x104   :  { %v445_v6 = vpop.f32.mrf.mxu1  ;;  %v375_v5 = vadd.f32 %v374_v13, %v95_v17 }
 0x105   :  { %v446_v62 = vadd.f32 %v445_v6, %v103_v57  ;;  %v376_v61 = vpop.f32.mrf.mxu0  ;;  %v1755_v47 = vpop.permute.xlu1 %1754  ;;  %v5470_v57 = vld [vmem:[#allocation9_spill] sm:$0xff] }
 0x106   :  { %v447_v56 = vpop.f32.mrf.mxu1  ;;  %v377_v50 = vadd.f32 %v376_v61, %v99_v14  ;;  %v1750_v44 = vpop.permute.xlu0 %1749 }
 0x107   :  { %v448_v48 = vadd.f32 %v447_v56, %v107_v31 }
 0x108   :  { %v454_v53 = vcombine.low %v375_v5, %v377_v50 }
 0x109   :  { %v455_v37 = vcombine.low %v446_v62, %v448_v48  ;;  %v1765_v36 = vpop.permute.xlu1 %1764 }
 0x10a   :  { %v462_v60 = vrot.slane %v454_v53, %v461_v54  ;;  %v4711_v29 = vpop.permute.xlu0 %1759 }
 0x10b   :  { %v469_v2 = vrot.slane %v455_v37, %v461_v54 }
 0x10d   :  { %v470_v24 = vcombine.low %v462_v60, %v469_v2  ;;  %v4716_v6 = vpop.permute.xlu1 %1774  ;;  %v5471_v2 = vld [vmem:[#allocation10_spill] sm:$0xff] }
 0x10e   :  { %v4718_v13 = vpop.permute.xlu0 %1769 }
 0x10f   :  { %472 = vst [vmem:[%s5419_s7] sm:$0xff] %v470_v24 }
 0x111   :  { %v4720_v61 = vpop.permute.xlu1 %1784 }
 0x112   :  { %v4722_v56 = vpop.permute.xlu0 %1779 }
 0x115   :  { %v4724_v5 = vpop.permute.xlu1 %1794 }
 0x116   :  { %v4726_v62 = vpop.permute.xlu0 %1789 }
 0x119   :  { %v4728_v37 = vpop.permute.xlu1 %1804 }
 0x11a   :  { %v4730_v54 = vpop.permute.xlu0 %1799 }
 0x11d   :  { %v4732_v31 = vpop.permute.xlu1 %1814 }
 0x11e   :  { %v4734_v32 = vpop.permute.xlu0 %1809 }
 0x11f   :  { %v3223_v14 = vpop.f32.mrf.mxu0 }
 0x120   :  { %v3333_v17 = vpop.f32.mrf.mxu1  ;;  %v1213_v20 = vadd.f32 %v3223_v14, %v4300_v30 }
 0x121   :  { %v2332_v35 = vadd.f32 %v3333_v17, %v1735_v42  ;;  %v1207_v38 = vpop.f32.mrf.mxu0  ;;  %v4746_v53 = vpop.permute.xlu1 %1824 }
 0x122   :  { %v2326_v43 = vpop.f32.mrf.mxu1  ;;  %1528 = vst.msk [vmem:[%s5420_s6 + $0x8] sm:$0xff] %vm1526_vm1, %v1213_v20  ;;  %v1208_v50 = vadd.f32 %v1207_v38, %v5470_v57  ;;  %v4748_v60 = vpop.permute.xlu0 %1819  ;;  %v5472_v20 = vld [vmem:[#allocation8_spill] sm:$0xff] }
 0x123   :  { %2934 = vst.msk [vmem:[%s5420_s6 + $0x208] sm:$0xff] %vm1526_vm1, %v2332_v35  ;;  %v2327_v48 = vadd.f32 %v2326_v43, %v1730_v41  ;;  %v3226_v30 = vpop.f32.mrf.mxu0 }
 0x124   :  { %v3336_v42 = vpop.f32.mrf.mxu1  ;;  %1527 = vst.msk [vmem:[%s5420_s6] sm:$0xff] %vm1526_vm1, %v1208_v50  ;;  %v1223_v24 = vadd.f32 %v3226_v30, %v5471_v2 }
 0x125   :  { %2933 = vst.msk [vmem:[%s5420_s6 + $0x200] sm:$0xff] %vm1526_vm1, %v2327_v48  ;;  %v2342_v14 = vadd.f32 %v3336_v42, %v1745_v23  ;;  %v1217_v41 = vpop.f32.mrf.mxu0  ;;  %v4768_v43 = vpop.permute.xlu1 %1834 }
 0x126   :  { %v2336_v17 = vpop.f32.mrf.mxu1  ;;  %1530 = vst.msk [vmem:[%s5420_s6 + $0x18] sm:$0xff] %vm1526_vm1, %v1223_v24  ;;  %v1218_v35 = vadd.f32 %v1217_v41, %v5472_v20  ;;  %v4770_v57 = vpop.permute.xlu0 %1829 }
 0x127   :  { %2936 = vst.msk [vmem:[%s5420_s6 + $0x218] sm:$0xff] %vm1526_vm1, %v2342_v14  ;;  %v2337_v38 = vadd.f32 %v2336_v17, %v1740_v55  ;;  %v3229_v23 = vpop.f32.mrf.mxu0 }
 0x128   :  { %v3339_v50 = vpop.f32.mrf.mxu1  ;;  %1529 = vst.msk [vmem:[%s5420_s6 + $0x10] sm:$0xff] %vm1526_vm1, %v1218_v35  ;;  %v1233_v48 = vadd.f32 %v3229_v23, %v4314_v12 }
 0x129   :  { %2935 = vst.msk [vmem:[%s5420_s6 + $0x210] sm:$0xff] %vm1526_vm1, %v2337_v38  ;;  %v2352_v30 = vadd.f32 %v3339_v50, %v1755_v47  ;;  %v1227_v55 = vpop.f32.mrf.mxu0  ;;  %v4790_v14 = vpop.permute.xlu1 %1844 }
 0x12a   :  { %v2346_v42 = vpop.f32.mrf.mxu1  ;;  %1532 = vst.msk [vmem:[%s5420_s6 + $0x28] sm:$0xff] %vm1526_vm1, %v1233_v48  ;;  %v1228_v2 = vadd.f32 %v1227_v55, %v4316_v7  ;;  %v4792_v41 = vpop.permute.xlu0 %1839 }
 0x12b   :  { %2938 = vst.msk [vmem:[%s5420_s6 + $0x228] sm:$0xff] %vm1526_vm1, %v2352_v30  ;;  %v2347_v24 = vadd.f32 %v2346_v42, %v1750_v44  ;;  %v3232_v12 = vpop.f32.mrf.mxu0 }
 0x12c   :  { %v3342_v47 = vpop.f32.mrf.mxu1  ;;  %1531 = vst.msk [vmem:[%s5420_s6 + $0x20] sm:$0xff] %vm1526_vm1, %v1228_v2  ;;  %v1243_v17 = vadd.f32 %v3232_v12, %v4330_v25 }
 0x12d   :  { %2937 = vst.msk [vmem:[%s5420_s6 + $0x220] sm:$0xff] %vm1526_vm1, %v2347_v24  ;;  %v2362_v7 = vadd.f32 %v3342_v47, %v1765_v36  ;;  %v1237_v44 = vpop.f32.mrf.mxu0  ;;  %v4813_v23 = vpop.permute.xlu1 %1854 }
 0x12e   :  { %v2356_v20 = vpop.f32.mrf.mxu1  ;;  %1534 = vst.msk [vmem:[%s5420_s6 + $0x38] sm:$0xff] %vm1526_vm1, %v1243_v17  ;;  %v1238_v35 = vadd.f32 %v1237_v44, %v4332_v49  ;;  %v4815_v25 = vpop.permute.xlu0 %1849 }
 0x12f   :  { %2940 = vst.msk [vmem:[%s5420_s6 + $0x238] sm:$0xff] %vm1526_vm1, %v2362_v7  ;;  %v2357_v38 = vadd.f32 %v2356_v20, %v4711_v29  ;;  %v3235_v36 = vpop.f32.mrf.mxu0 }
 0x130   :  { %v3345_v50 = vpop.f32.mrf.mxu1  ;;  %1533 = vst.msk [vmem:[%s5420_s6 + $0x30] sm:$0xff] %vm1526_vm1, %v1238_v35  ;;  %v1253_v49 = vadd.f32 %v3235_v36, %v4346_v63 }
 0x131   :  { %2939 = vst.msk [vmem:[%s5420_s6 + $0x230] sm:$0xff] %vm1526_vm1, %v2357_v38  ;;  %v2372_v29 = vadd.f32 %v3345_v50, %v4716_v6  ;;  %v1247_v48 = vpop.f32.mrf.mxu0  ;;  %v4837_v2 = vpop.permute.xlu1 %1864 }
 0x132   :  { %v2366_v30 = vpop.f32.mrf.mxu1  ;;  %1536 = vst.msk [vmem:[%s5420_s6 + $0x48] sm:$0xff] %vm1526_vm1, %v1253_v49  ;;  %v1248_v55 = vadd.f32 %v1247_v48, %v4348_v4  ;;  %v4839_v63 = vpop.permute.xlu0 %1859 }
 0x133   :  { %2942 = vst.msk [vmem:[%s5420_s6 + $0x248] sm:$0xff] %vm1526_vm1, %v2372_v29  ;;  %v2367_v42 = vadd.f32 %v2366_v30, %v4718_v13  ;;  %v3238_v6 = vpop.f32.mrf.mxu0 }
 0x134   :  { %v3348_v24 = vpop.f32.mrf.mxu1  ;;  %1535 = vst.msk [vmem:[%s5420_s6 + $0x40] sm:$0xff] %vm1526_vm1, %v1248_v55  ;;  %v1263_v4 = vadd.f32 %v3238_v6, %v4362_v10 }
 0x135   :  { %2941 = vst.msk [vmem:[%s5420_s6 + $0x240] sm:$0xff] %vm1526_vm1, %v2367_v42  ;;  %v2382_v13 = vadd.f32 %v3348_v24, %v4720_v61  ;;  %v1257_v12 = vpop.f32.mrf.mxu0  ;;  %v4861_v44 = vpop.permute.xlu1 %1874 }
 0x136   :  { %v2376_v47 = vpop.f32.mrf.mxu1  ;;  %1538 = vst.msk [vmem:[%s5420_s6 + $0x58] sm:$0xff] %vm1526_vm1, %v1263_v4  ;;  %v1258_v17 = vadd.f32 %v1257_v12, %v4364_v3  ;;  %v4863_v10 = vpop.permute.xlu0 %1869 }
 0x137   :  { %2944 = vst.msk [vmem:[%s5420_s6 + $0x258] sm:$0xff] %vm1526_vm1, %v2382_v13  ;;  %v2377_v7 = vadd.f32 %v2376_v47, %v4722_v56  ;;  %v3241_v61 = vpop.f32.mrf.mxu0 }
 0x138   :  { %v3351_v20 = vpop.f32.mrf.mxu1  ;;  %1537 = vst.msk [vmem:[%s5420_s6 + $0x50] sm:$0xff] %vm1526_vm1, %v1258_v17  ;;  %v1273_v3 = vadd.f32 %v3241_v61, %v4378_v9 }
 0x139   :  { %2943 = vst.msk [vmem:[%s5420_s6 + $0x250] sm:$0xff] %vm1526_vm1, %v2377_v7  ;;  %v2392_v56 = vadd.f32 %v3351_v20, %v4724_v5  ;;  %v1267_v35 = vpop.f32.mrf.mxu0  ;;  %v4885_v49 = vpop.permute.xlu1 %1884 }
 0x13a   :  { %v2386_v38 = vpop.f32.mrf.mxu1  ;;  %1540 = vst.msk [vmem:[%s5420_s6 + $0x68] sm:$0xff] %vm1526_vm1, %v1273_v3  ;;  %v1268_v36 = vadd.f32 %v1267_v35, %v4380_v15  ;;  %v4895_v29 = vpop.permute.xlu0 %1879 }
 0x13b   :  { %2946 = vst.msk [vmem:[%s5420_s6 + $0x268] sm:$0xff] %vm1526_vm1, %v2392_v56  ;;  %v2387_v50 = vadd.f32 %v2386_v38, %v4726_v62  ;;  %v3244_v9 = vpop.f32.mrf.mxu0 }
 0x13c   :  { %v3354_v5 = vpop.f32.mrf.mxu1  ;;  %1539 = vst.msk [vmem:[%s5420_s6 + $0x60] sm:$0xff] %vm1526_vm1, %v1268_v36  ;;  %v1283_v15 = vadd.f32 %v3244_v9, %v4394_v16 }
 0x13d   :  { %2945 = vst.msk [vmem:[%s5420_s6 + $0x260] sm:$0xff] %vm1526_vm1, %v2387_v50  ;;  %v2402_v62 = vadd.f32 %v3354_v5, %v4728_v37  ;;  %v1277_v48 = vpop.f32.mrf.mxu0  ;;  %v4917_v37 = vpop.permute.xlu1 %1894 }
 0x13e   :  { %v2396_v30 = vpop.f32.mrf.mxu1  ;;  %1542 = vst.msk [vmem:[%s5420_s6 + $0x78] sm:$0xff] %vm1526_vm1, %v1283_v15  ;;  %v1278_v55 = vadd.f32 %v1277_v48, %v4396_v21  ;;  %v4921_v13 = vpop.permute.xlu0 %1889 }
 0x13f   :  { %2948 = vst.msk [vmem:[%s5420_s6 + $0x278] sm:$0xff] %vm1526_vm1, %v2402_v62  ;;  %v2397_v42 = vadd.f32 %v2396_v30, %v4730_v54  ;;  %v3247_v6 = vpop.f32.mrf.mxu0 }
 0x140   :  { %v3357_v16 = vpop.f32.mrf.mxu1  ;;  %1541 = vst.msk [vmem:[%s5420_s6 + $0x70] sm:$0xff] %vm1526_vm1, %v1278_v55  ;;  %v1293_v24 = vadd.f32 %v3247_v6, %v4410_v22 }
 0x141   :  { %2947 = vst.msk [vmem:[%s5420_s6 + $0x270] sm:$0xff] %vm1526_vm1, %v2397_v42  ;;  %v2412_v21 = vadd.f32 %v3357_v16, %v4732_v31  ;;  %v1287_v4 = vpop.f32.mrf.mxu0  ;;  %v4943_v20 = vpop.permute.xlu1 %1904 }
 0x142   :  { %v2406_v54 = vpop.f32.mrf.mxu1  ;;  %1544 = vst.msk [vmem:[%s5420_s6 + $0x88] sm:$0xff] %vm1526_vm1, %v1293_v24  ;;  %v1288_v12 = vadd.f32 %v1287_v4, %v4412_v27  ;;  %v4955_v56 = vpop.permute.xlu0 %1899 }
 0x143   :  { %2950 = vst.msk [vmem:[%s5420_s6 + $0x288] sm:$0xff] %vm1526_vm1, %v2412_v21  ;;  %v2407_v22 = vadd.f32 %v2406_v54, %v4734_v32  ;;  %v3250_v47 = vpop.f32.mrf.mxu0 }
 0x144   :  { %v3360_v31 = vpop.f32.mrf.mxu1  ;;  %1543 = vst.msk [vmem:[%s5420_s6 + $0x80] sm:$0xff] %vm1526_vm1, %v1288_v12  ;;  %v1303_v17 = vadd.f32 %v3250_v47, %v4426_v28 }
 0x145   :  { %2949 = vst.msk [vmem:[%s5420_s6 + $0x280] sm:$0xff] %vm1526_vm1, %v2407_v22  ;;  %v2422_v7 = vadd.f32 %v3360_v31, %v4746_v53  ;;  %v1297_v61 = vpop.f32.mrf.mxu0  ;;  %v4977_v5 = vpop.permute.xlu1 %1914 }
 0x146   :  { %v2416_v27 = vpop.f32.mrf.mxu1  ;;  %1546 = vst.msk [vmem:[%s5420_s6 + $0x98] sm:$0xff] %vm1526_vm1, %v1303_v17  ;;  %v1298_v32 = vadd.f32 %v1297_v61, %v4428_v33  ;;  %v4989_v62 = vpop.permute.xlu0 %1909 }
 0x147   :  { %2952 = vst.msk [vmem:[%s5420_s6 + $0x298] sm:$0xff] %vm1526_vm1, %v2422_v7  ;;  %v2417_v28 = vadd.f32 %v2416_v27, %v4748_v60  ;;  %v3253_v3 = vpop.f32.mrf.mxu0 }
 0x148   :  { %v3363_v53 = vpop.f32.mrf.mxu1  ;;  %1545 = vst.msk [vmem:[%s5420_s6 + $0x90] sm:$0xff] %vm1526_vm1, %v1298_v32  ;;  %v1313_v35 = vadd.f32 %v3253_v3, %v4442_v34 }
 0x149   :  { %2951 = vst.msk [vmem:[%s5420_s6 + $0x290] sm:$0xff] %vm1526_vm1, %v2417_v28  ;;  %v2432_v33 = vadd.f32 %v3363_v53, %v4768_v43  ;;  %v1307_v38 = vpop.f32.mrf.mxu0  ;;  %v5011_v16 = vpop.permute.xlu1 %1924 }
 0x14a   :  { %v2426_v60 = vpop.f32.mrf.mxu1  ;;  %1548 = vst.msk [vmem:[%s5420_s6 + $0xa8] sm:$0xff] %vm1526_vm1, %v1313_v35  ;;  %v1308_v36 = vadd.f32 %v1307_v38, %v4444_v39  ;;  %v5023_v21 = vpop.permute.xlu0 %1919 }
 0x14b   :  { %2954 = vst.msk [vmem:[%s5420_s6 + $0x2a8] sm:$0xff] %vm1526_vm1, %v2432_v33  ;;  %v2427_v50 = vadd.f32 %v2426_v60, %v4770_v57  ;;  %v3256_v9 = vpop.f32.mrf.mxu0 }
 0x14c   :  { %v3366_v34 = vpop.f32.mrf.mxu1  ;;  %1547 = vst.msk [vmem:[%s5420_s6 + $0xa0] sm:$0xff] %vm1526_vm1, %v1308_v36  ;;  %v1323_v43 = vadd.f32 %v3256_v9, %v4458_v40 }
 0x14d   :  { %2953 = vst.msk [vmem:[%s5420_s6 + $0x2a0] sm:$0xff] %vm1526_vm1, %v2427_v50  ;;  %v2442_v39 = vadd.f32 %v3366_v34, %v4790_v14  ;;  %v1317_v15 = vpop.f32.mrf.mxu0  ;;  %v5045_v31 = vpop.permute.xlu1 %1934 }
 0x14e   :  { %v2436_v57 = vpop.f32.mrf.mxu1  ;;  %1550 = vst.msk [vmem:[%s5420_s6 + $0xb8] sm:$0xff] %vm1526_vm1, %v1323_v43  ;;  %v1318_v48 = vadd.f32 %v1317_v15, %v4460_v45  ;;  %v5057_v7 = vpop.permute.xlu0 %1929 }
 0x14f   :  { %2956 = vst.msk [vmem:[%s5420_s6 + $0x2b8] sm:$0xff] %vm1526_vm1, %v2442_v39  ;;  %v2437_v40 = vadd.f32 %v2436_v57, %v4792_v41  ;;  %v3259_v30 = vpop.f32.mrf.mxu0 }
 0x150   :  { %v3369_v14 = vpop.f32.mrf.mxu1  ;;  %1549 = vst.msk [vmem:[%s5420_s6 + $0xb0] sm:$0xff] %vm1526_vm1, %v1318_v48  ;;  %v1333_v55 = vadd.f32 %v3259_v30, %v4474_v46  ;;  %v5473_v48 = vld [vmem:[#allocation11_spill] sm:$0xff] }
 0x151   :  { %2955 = vst.msk [vmem:[%s5420_s6 + $0x2b0] sm:$0xff] %vm1526_vm1, %v2437_v40  ;;  %v2452_v42 = vadd.f32 %v3369_v14, %v4813_v23  ;;  %v1327_v6 = vpop.f32.mrf.mxu0  ;;  %v5079_v53 = vpop.permute.xlu1 %1944 }
 0x152   :  { %v2446_v45 = vpop.f32.mrf.mxu1  ;;  %1552 = vst.msk [vmem:[%s5420_s6 + $0xc8] sm:$0xff] %vm1526_vm1, %v1333_v55  ;;  %v1328_v41 = vadd.f32 %v1327_v6, %v4476_v51  ;;  %v5091_v33 = vpop.permute.xlu0 %1939 }
 0x153   :  { %2958 = vst.msk [vmem:[%s5420_s6 + $0x2c8] sm:$0xff] %vm1526_vm1, %v2452_v42  ;;  %v2447_v46 = vadd.f32 %v2446_v45, %v4815_v25  ;;  %v3262_v24 = vpop.f32.mrf.mxu0 }
 0x154   :  { %v3372_v23 = vpop.f32.mrf.mxu1  ;;  %1551 = vst.msk [vmem:[%s5420_s6 + $0xc0] sm:$0xff] %vm1526_vm1, %v1328_v41  ;;  %v1343_v4 = vadd.f32 %v3262_v24, %v4490_v52 }
 0x155   :  { %2957 = vst.msk [vmem:[%s5420_s6 + $0x2c0] sm:$0xff] %vm1526_vm1, %v2447_v46  ;;  %v2462_v51 = vadd.f32 %v3372_v23, %v4837_v2  ;;  %v1337_v54 = vpop.f32.mrf.mxu0  ;;  %v5113_v34 = vpop.permute.xlu1 %1954  ;;  %v5475_v46 = vld [vmem:[#allocation13_spill] sm:$0xff] }
 0x156   :  { %v2456_v25 = vpop.f32.mrf.mxu1  ;;  %1554 = vst.msk [vmem:[%s5420_s6 + $0xd8] sm:$0xff] %vm1526_vm1, %v1343_v4  ;;  %v1338_v12 = vadd.f32 %v1337_v54, %v4492_v58  ;;  %v5125_v39 = vpop.permute.xlu0 %1949 }
 0x157   :  { %2960 = vst.msk [vmem:[%s5420_s6 + $0x2d8] sm:$0xff] %vm1526_vm1, %v2462_v51  ;;  %v2457_v22 = vadd.f32 %v2456_v25, %v4839_v63  ;;  %v3265_v47 = vpop.f32.mrf.mxu0  ;;  %v5476_v51 = vld [vmem:[#allocation14_spill] sm:$0xff] }
 0x158   :  { %v3375_v52 = vpop.f32.mrf.mxu1  ;;  %1553 = vst.msk [vmem:[%s5420_s6 + $0xd0] sm:$0xff] %vm1526_vm1, %v1338_v12  ;;  %v1353_v2 = vadd.f32 %v3265_v47, %v4506_v59 }
 0x159   :  { %2959 = vst.msk [vmem:[%s5420_s6 + $0x2d0] sm:$0xff] %vm1526_vm1, %v2457_v22  ;;  %v2472_v58 = vadd.f32 %v3375_v52, %v4861_v44  ;;  %v1347_v17 = vpop.f32.mrf.mxu0  ;;  %v5147_v55 = vpop.permute.xlu1 %1964 }
 0x15a   :  { %v2466_v63 = vpop.f32.mrf.mxu1  ;;  %1556 = vst.msk [vmem:[%s5420_s6 + $0xe8] sm:$0xff] %vm1526_vm1, %v1353_v2  ;;  %v1348_v61 = vadd.f32 %v1347_v17, %v4508_v0  ;;  %v5159_v41 = vpop.permute.xlu0 %1959 }
 0x15b   :  { %2962 = vst.msk [vmem:[%s5420_s6 + $0x2e8] sm:$0xff] %vm1526_vm1, %v2472_v58  ;;  %v2467_v59 = vadd.f32 %v2466_v63, %v4863_v10  ;;  %v3268_v27 = vpop.f32.mrf.mxu0  ;;  %v5478_v63 = vld [vmem:[#allocation16_spill] sm:$0xff] }
 0x15c   :  { %v3378_v44 = vpop.f32.mrf.mxu1  ;;  %1555 = vst.msk [vmem:[%s5420_s6 + $0xe0] sm:$0xff] %vm1526_vm1, %v1348_v61  ;;  %v1363_v32 = vadd.f32 %v3268_v27, %v4522_v1 }
 0x15d   :  { %2961 = vst.msk [vmem:[%s5420_s6 + $0x2e0] sm:$0xff] %vm1526_vm1, %v2467_v59  ;;  %v2482_v28 = vadd.f32 %v3378_v44, %v4885_v49  ;;  %v1357_v3 = vpop.f32.mrf.mxu0  ;;  %v1975_v47 = vpop.permute.xlu1 %1974 }
 0x15e   :  { %v2476_v0 = vpop.f32.mrf.mxu1  ;;  %1558 = vst.msk [vmem:[%s5420_s6 + $0xf8] sm:$0xff] %vm1526_vm1, %v1363_v32  ;;  %v1358_v10 = vadd.f32 %v1357_v3, %v4524_v8 }
 0x15f   :  { %2964 = vst.msk [vmem:[%s5420_s6 + $0x2f8] sm:$0xff] %vm1526_vm1, %v2482_v28  ;;  %v2477_v1 = vadd.f32 %v2476_v0, %v4895_v29  ;;  %v3271_v35 = vpop.f32.mrf.mxu0 }
 0x160   :  { %v3381_v49 = vpop.f32.mrf.mxu1  ;;  %1557 = vst.msk [vmem:[%s5420_s6 + $0xf0] sm:$0xff] %vm1526_vm1, %v1358_v10  ;;  %v1373_v38 = vadd.f32 %v3271_v35, %v4538_v11 }
 0x161   :  { %2963 = vst.msk [vmem:[%s5420_s6 + $0x2f0] sm:$0xff] %vm1526_vm1, %v2477_v1  ;;  %v2492_v8 = vadd.f32 %v3381_v49, %v4917_v37  ;;  %v1367_v60 = vpop.f32.mrf.mxu0  ;;  %v1985_v10 = vpop.permute.xlu1 %1984 }
 0x162   :  { %v2486_v29 = vpop.f32.mrf.mxu1  ;;  %1560 = vst.msk [vmem:[%s5420_s6 + $0x108] sm:$0xff] %vm1526_vm1, %v1373_v38  ;;  %v1368_v36 = vadd.f32 %v1367_v60, %v4540_v18 }
 0x163   :  { %2966 = vst.msk [vmem:[%s5420_s6 + $0x308] sm:$0xff] %vm1526_vm1, %v2492_v8  ;;  %v2487_v50 = vadd.f32 %v2486_v29, %v4921_v13  ;;  %v3274_v9 = vpop.f32.mrf.mxu0  ;;  %v5481_v8 = vld [vmem:[#allocation19_spill] sm:$0xff] }
 0x164   :  { %v3384_v11 = vpop.f32.mrf.mxu1  ;;  %1559 = vst.msk [vmem:[%s5420_s6 + $0x100] sm:$0xff] %vm1526_vm1, %v1368_v36  ;;  %v1383_v37 = vadd.f32 %v3274_v9, %v4554_v19 }
 0x165   :  { %2965 = vst.msk [vmem:[%s5420_s6 + $0x300] sm:$0xff] %vm1526_vm1, %v2487_v50  ;;  %v2502_v18 = vadd.f32 %v3384_v11, %v4943_v20  ;;  %v1377_v43 = vpop.f32.mrf.mxu0 }
 0x166   :  { %v2496_v13 = vpop.f32.mrf.mxu1  ;;  %1562 = vst.msk [vmem:[%s5420_s6 + $0x118] sm:$0xff] %vm1526_vm1, %v1383_v37  ;;  %v1378_v15 = vadd.f32 %v1377_v43, %v4556_v26  ;;  %v1995_v43 = vpop.permute.xlu1 %1994 }
 0x167   :  { %2968 = vst.msk [vmem:[%s5420_s6 + $0x318] sm:$0xff] %vm1526_vm1, %v2502_v18  ;;  %v2497_v19 = vadd.f32 %v2496_v13, %v4955_v56  ;;  %v3277_v57 = vpop.f32.mrf.mxu0  ;;  %v5474_v56 = vld [vmem:[#allocation12_spill] sm:$0xff] }
 0x168   :  { %v3387_v20 = vpop.f32.mrf.mxu1  ;;  %1561 = vst.msk [vmem:[%s5420_s6 + $0x110] sm:$0xff] %vm1526_vm1, %v1378_v15  ;;  %v1393_v40 = vadd.f32 %v3277_v57, %v5473_v48 }
 0x169   :  { %2967 = vst.msk [vmem:[%s5420_s6 + $0x310] sm:$0xff] %vm1526_vm1, %v2497_v19  ;;  %v2512_v30 = vadd.f32 %v3387_v20, %v4977_v5  ;;  %v1387_v14 = vpop.f32.mrf.mxu0  ;;  %v5484_v20 = vld [vmem:[#allocation22_spill] sm:$0xff] }
 0x16a   :  { %v2506_v26 = vpop.f32.mrf.mxu1  ;;  %1564 = vst.msk [vmem:[%s5420_s6 + $0x128] sm:$0xff] %vm1526_vm1, %v1393_v40  ;;  %v1388_v42 = vadd.f32 %v1387_v14, %v5474_v56 }
 0x16b   :  { %2970 = vst.msk [vmem:[%s5420_s6 + $0x328] sm:$0xff] %vm1526_vm1, %v2512_v30  ;;  %v2507_v6 = vadd.f32 %v2506_v26, %v4989_v62  ;;  %v3280_v45 = vpop.f32.mrf.mxu0  ;;  %v5485_v26 = vld [vmem:[#allocation23_spill] sm:$0xff] }
 0x16c   :  { %v3390_v5 = vpop.f32.mrf.mxu1  ;;  %1563 = vst.msk [vmem:[%s5420_s6 + $0x120] sm:$0xff] %vm1526_vm1, %v1388_v42  ;;  %v1403_v24 = vadd.f32 %v3280_v45, %v5475_v46  ;;  %v2005_v45 = vpop.permute.xlu1 %2004 }
 0x16d   :  { %2969 = vst.msk [vmem:[%s5420_s6 + $0x320] sm:$0xff] %vm1526_vm1, %v2507_v6  ;;  %v2522_v23 = vadd.f32 %v3390_v5, %v5011_v16  ;;  %v1397_v4 = vpop.f32.mrf.mxu0  ;;  %v5477_v16 = vld [vmem:[#allocation15_spill] sm:$0xff]  ;;  %v5486_v5 = vld [vmem:[#allocation24_spill] sm:$0xff] }
 0x16e   :  { %v2516_v62 = vpop.f32.mrf.mxu1  ;;  %1566 = vst.msk [vmem:[%s5420_s6 + $0x138] sm:$0xff] %vm1526_vm1, %v1403_v24  ;;  %v1398_v54 = vadd.f32 %v1397_v4, %v5476_v51 }
 0x16f   :  { %2972 = vst.msk [vmem:[%s5420_s6 + $0x338] sm:$0xff] %vm1526_vm1, %v2522_v23  ;;  %v2517_v25 = vadd.f32 %v2516_v62, %v5023_v21  ;;  %v3283_v12 = vpop.f32.mrf.mxu0  ;;  %v1970_v21 = vpop.permute.xlu0 %1969  ;;  %v5487_v62 = vld [vmem:[#allocation25_spill] sm:$0xff] }
 0x170   :  { %v3393_v22 = vpop.f32.mrf.mxu1  ;;  %1565 = vst.msk [vmem:[%s5420_s6 + $0x130] sm:$0xff] %vm1526_vm1, %v1398_v54  ;;  %v1413_v52 = vadd.f32 %v3283_v12, %v5477_v16 }
 0x171   :  { %2971 = vst.msk [vmem:[%s5420_s6 + $0x330] sm:$0xff] %vm1526_vm1, %v2517_v25  ;;  %v2532_v2 = vadd.f32 %v3393_v22, %v5045_v31  ;;  %v1407_v58 = vpop.f32.mrf.mxu0  ;;  %v5479_v31 = vld [vmem:[#allocation17_spill] sm:$0xff]  ;;  %v5488_v22 = vld [vmem:[#allocation26_spill] sm:$0xff] }
 0x172   :  { %v2526_v17 = vpop.f32.mrf.mxu1  ;;  %1568 = vst.msk [vmem:[%s5420_s6 + $0x148] sm:$0xff] %vm1526_vm1, %v1413_v52  ;;  %v1408_v61 = vadd.f32 %v1407_v58, %v5478_v63  ;;  %v2015_v58 = vpop.permute.xlu1 %2014 }
 0x173   :  { %2974 = vst.msk [vmem:[%s5420_s6 + $0x348] sm:$0xff] %vm1526_vm1, %v2532_v2  ;;  %v2527_v59 = vadd.f32 %v2526_v17, %v5057_v7  ;;  %v3286_v27 = vpop.f32.mrf.mxu0  ;;  %v5480_v7 = vld [vmem:[#allocation18_spill] sm:$0xff]  ;;  %v5489_v17 = vld [vmem:[#allocation27_spill] sm:$0xff] }
 0x174   :  { %v3396_v44 = vpop.f32.mrf.mxu1  ;;  %1567 = vst.msk [vmem:[%s5420_s6 + $0x140] sm:$0xff] %vm1526_vm1, %v1408_v61  ;;  %v1423_v32 = vadd.f32 %v3286_v27, %v5479_v31 }
 0x175   :  { %2973 = vst.msk [vmem:[%s5420_s6 + $0x340] sm:$0xff] %vm1526_vm1, %v2527_v59  ;;  %v2542_v28 = vadd.f32 %v3396_v44, %v5079_v53  ;;  %v1417_v3 = vpop.f32.mrf.mxu0  ;;  %v1980_v53 = vpop.permute.xlu0 %1979  ;;  %v5490_v44 = vld [vmem:[#allocation28_spill] sm:$0xff] }
 0x176   :  { %v2536_v0 = vpop.f32.mrf.mxu1  ;;  %1570 = vst.msk [vmem:[%s5420_s6 + $0x158] sm:$0xff] %vm1526_vm1, %v1423_v32  ;;  %v1418_v1 = vadd.f32 %v1417_v3, %v5480_v7 }
 0x177   :  { %2976 = vst.msk [vmem:[%s5420_s6 + $0x358] sm:$0xff] %vm1526_vm1, %v2542_v28  ;;  %v2537_v35 = vadd.f32 %v2536_v0, %v5091_v33  ;;  %v3289_v49 = vpop.f32.mrf.mxu0  ;;  %v5482_v33 = vld [vmem:[#allocation20_spill] sm:$0xff]  ;;  %v5491_v0 = vld [vmem:[#allocation29_spill] sm:$0xff] }
 0x178   :  { %v3399_v38 = vpop.f32.mrf.mxu1  ;;  %1569 = vst.msk [vmem:[%s5420_s6 + $0x150] sm:$0xff] %vm1526_vm1, %v1418_v1  ;;  %v1433_v60 = vadd.f32 %v3289_v49, %v5481_v8  ;;  %v2025_v49 = vpop.permute.xlu1 %2024 }
 0x179   :  { %2975 = vst.msk [vmem:[%s5420_s6 + $0x350] sm:$0xff] %vm1526_vm1, %v2537_v35  ;;  %v2552_v29 = vadd.f32 %v3399_v38, %v5113_v34  ;;  %v1427_v36 = vpop.f32.mrf.mxu0  ;;  %v5483_v34 = vld [vmem:[#allocation21_spill] sm:$0xff]  ;;  %v5492_v38 = vld [vmem:[#allocation30_spill] sm:$0xff] }
 0x17a   :  { %v2546_v50 = vpop.f32.mrf.mxu1  ;;  %1572 = vst.msk [vmem:[%s5420_s6 + $0x168] sm:$0xff] %vm1526_vm1, %v1433_v60  ;;  %v1428_v9 = vadd.f32 %v1427_v36, %v5482_v33 }
 0x17b   :  { %2978 = vst.msk [vmem:[%s5420_s6 + $0x368] sm:$0xff] %vm1526_vm1, %v2552_v29  ;;  %v2547_v11 = vadd.f32 %v2546_v50, %v5125_v39  ;;  %v3292_v37 = vpop.f32.mrf.mxu0  ;;  %v1990_v39 = vpop.permute.xlu0 %1989  ;;  %v5493_v50 = vld [vmem:[#allocation31_spill] sm:$0xff] }
 0x17c   :  { %v3402_v18 = vpop.f32.mrf.mxu1  ;;  %1571 = vst.msk [vmem:[%s5420_s6 + $0x160] sm:$0xff] %vm1526_vm1, %v1428_v9  ;;  %v1443_v13 = vadd.f32 %v3292_v37, %v5483_v34 }
 0x17d   :  { %2977 = vst.msk [vmem:[%s5420_s6 + $0x360] sm:$0xff] %vm1526_vm1, %v2547_v11  ;;  %v2562_v15 = vadd.f32 %v3402_v18, %v5147_v55  ;;  %v1437_v19 = vpop.f32.mrf.mxu0  ;;  %v5494_v18 = vld [vmem:[#allocation32_spill] sm:$0xff] }
 0x17e   :  { %v2556_v57 = vpop.f32.mrf.mxu1  ;;  %1574 = vst.msk [vmem:[%s5420_s6 + $0x178] sm:$0xff] %vm1526_vm1, %v1443_v13  ;;  %v1438_v48 = vadd.f32 %v1437_v19, %v5484_v20  ;;  %v2035_v19 = vpop.permute.xlu1 %2034 }
 0x17f   :  { %2980 = vst.msk [vmem:[%s5420_s6 + $0x378] sm:$0xff] %vm1526_vm1, %v2562_v15  ;;  %v2557_v40 = vadd.f32 %v2556_v57, %v5159_v41  ;;  %v3295_v30 = vpop.f32.mrf.mxu0  ;;  %v2000_v4 = vpop.permute.xlu0 %1999  ;;  %v5495_v57 = vld [vmem:[#allocation33_spill] sm:$0xff] }
 0x180   :  { %v3405_v14 = vpop.f32.mrf.mxu1  ;;  %1573 = vst.msk [vmem:[%s5420_s6 + $0x170] sm:$0xff] %vm1526_vm1, %v1438_v48  ;;  %v1453_v55 = vadd.f32 %v3295_v30, %v5485_v26 }
 0x181   :  { %2979 = vst.msk [vmem:[%s5420_s6 + $0x370] sm:$0xff] %vm1526_vm1, %v2557_v40  ;;  %v2572_v56 = vadd.f32 %v3405_v14, %v1975_v47  ;;  %v1447_v42 = vpop.f32.mrf.mxu0  ;;  %v5496_v14 = vld [vmem:[#allocation34_spill] sm:$0xff] }
 0x182   :  { %v2566_v6 = vpop.f32.mrf.mxu1  ;;  %1576 = vst.msk [vmem:[%s5420_s6 + $0x188] sm:$0xff] %vm1526_vm1, %v1453_v55  ;;  %v1448_v41 = vadd.f32 %v1447_v42, %v5486_v5 }
 0x183   :  { %2982 = vst.msk [vmem:[%s5420_s6 + $0x388] sm:$0xff] %vm1526_vm1, %v2572_v56  ;;  %v2567_v46 = vadd.f32 %v2566_v6, %v1970_v21  ;;  %v3298_v24 = vpop.f32.mrf.mxu0  ;;  %v2010_v27 = vpop.permute.xlu0 %2009  ;;  %v5497_v6 = vld [vmem:[#allocation2_spill] sm:$0xff] }
 0x184   :  { %v3408_v23 = vpop.f32.mrf.mxu1  ;;  %1575 = vst.msk [vmem:[%s5420_s6 + $0x180] sm:$0xff] %vm1526_vm1, %v1448_v41  ;;  %v1463_v51 = vadd.f32 %v3298_v24, %v5487_v62  ;;  %v2045_v24 = vpop.permute.xlu1 %2044 }
 0x185   :  { %2981 = vst.msk [vmem:[%s5420_s6 + $0x380] sm:$0xff] %vm1526_vm1, %v2567_v46  ;;  %v2582_v54 = vadd.f32 %v3408_v23, %v1985_v10  ;;  %v1457_v25 = vpop.f32.mrf.mxu0  ;;  %v5498_v23 = vld [vmem:[#allocation35_spill] sm:$0xff] }
 0x186   :  { %v2576_v12 = vpop.f32.mrf.mxu1  ;;  %1578 = vst.msk [vmem:[%s5420_s6 + $0x198] sm:$0xff] %vm1526_vm1, %v1463_v51  ;;  %v1458_v47 = vadd.f32 %v1457_v25, %v5488_v22 }
 0x187   :  { %2984 = vst.msk [vmem:[%s5420_s6 + $0x398] sm:$0xff] %vm1526_vm1, %v2582_v54  ;;  %v2577_v16 = vadd.f32 %v2576_v12, %v1980_v53  ;;  %v3301_v52 = vpop.f32.mrf.mxu0  ;;  %v2020_v36 = vpop.permute.xlu0 %2019  ;;  %v5499_v12 = vld [vmem:[#allocation3_spill] sm:$0xff] }
 0x188   :  { %v3411_v2 = vpop.f32.mrf.mxu1  ;;  %1577 = vst.msk [vmem:[%s5420_s6 + $0x190] sm:$0xff] %vm1526_vm1, %v1458_v47  ;;  %v1473_v21 = vadd.f32 %v3301_v52, %v5489_v17 }
 0x189   :  { %2983 = vst.msk [vmem:[%s5420_s6 + $0x390] sm:$0xff] %vm1526_vm1, %v2577_v16  ;;  %v2592_v63 = vadd.f32 %v3411_v2, %v1995_v43  ;;  %v1467_v61 = vpop.f32.mrf.mxu0  ;;  %v5500_v2 = vld [vmem:[#allocation4_spill] sm:$0xff] }
 0x18a   :  { %v2586_v59 = vpop.f32.mrf.mxu1  ;;  %1580 = vst.msk [vmem:[%s5420_s6 + $0x1a8] sm:$0xff] %vm1526_vm1, %v1473_v21  ;;  %v1468_v31 = vadd.f32 %v1467_v61, %v5490_v44 }
 0x18b   :  { %2986 = vst.msk [vmem:[%s5420_s6 + $0x3a8] sm:$0xff] %vm1526_vm1, %v2592_v63  ;;  %v2587_v32 = vadd.f32 %v2586_v59, %v1990_v39  ;;  %v3304_v28 = vpop.f32.mrf.mxu0  ;;  %v2030_v30 = vpop.permute.xlu0 %2029 }
 0x18c   :  { %v3414_v3 = vpop.f32.mrf.mxu1  ;;  %1579 = vst.msk [vmem:[%s5420_s6 + $0x1a0] sm:$0xff] %vm1526_vm1, %v1468_v31  ;;  %v1483_v10 = vadd.f32 %v3304_v28, %v5491_v0 }
 0x18d   :  { %2985 = vst.msk [vmem:[%s5420_s6 + $0x3a0] sm:$0xff] %vm1526_vm1, %v2587_v32  ;;  %v2602_v7 = vadd.f32 %v3414_v3, %v2005_v45  ;;  %v1477_v1 = vpop.f32.mrf.mxu0 }
 0x18e   :  { %v2596_v35 = vpop.f32.mrf.mxu1  ;;  %1582 = vst.msk [vmem:[%s5420_s6 + $0x1b8] sm:$0xff] %vm1526_vm1, %v1483_v10  ;;  %v1478_v53 = vadd.f32 %v1477_v1, %v5492_v38 }
 0x18f   :  { %2988 = vst.msk [vmem:[%s5420_s6 + $0x3b8] sm:$0xff] %vm1526_vm1, %v2602_v7  ;;  %v2597_v8 = vadd.f32 %v2596_v35, %v2000_v4  ;;  %v3307_v60 = vpop.f32.mrf.mxu0  ;;  %v2040_v25 = vpop.permute.xlu0 %2039 }
 0x190   :  { %v3417_v29 = vpop.f32.mrf.mxu1  ;;  %1581 = vst.msk [vmem:[%s5420_s6 + $0x1b0] sm:$0xff] %vm1526_vm1, %v1478_v53  ;;  %v1493_v33 = vadd.f32 %v3307_v60, %v5493_v50 }
 0x191   :  { %2987 = vst.msk [vmem:[%s5420_s6 + $0x3b0] sm:$0xff] %vm1526_vm1, %v2597_v8  ;;  %v2612_v9 = vadd.f32 %v3417_v29, %v2015_v58  ;;  %v1487_v11 = vpop.f32.mrf.mxu0 }
 0x192   :  { %v2606_v37 = vpop.f32.mrf.mxu1  ;;  %1584 = vst.msk [vmem:[%s5420_s6 + $0x1c8] sm:$0xff] %vm1526_vm1, %v1493_v33  ;;  %v1488_v43 = vadd.f32 %v1487_v11, %v5494_v18 }
 0x193   :  { %2990 = vst.msk [vmem:[%s5420_s6 + $0x3c8] sm:$0xff] %vm1526_vm1, %v2612_v9  ;;  %v2607_v34 = vadd.f32 %v2606_v37, %v2010_v27  ;;  %v3310_v13 = vpop.f32.mrf.mxu0 }
 0x194   :  { %v3420_v15 = vpop.f32.mrf.mxu1  ;;  %1583 = vst.msk [vmem:[%s5420_s6 + $0x1c0] sm:$0xff] %vm1526_vm1, %v1488_v43  ;;  %v1503_v39 = vadd.f32 %v3310_v13, %v5495_v57 }
 0x195   :  { %2989 = vst.msk [vmem:[%s5420_s6 + $0x3c0] sm:$0xff] %vm1526_vm1, %v2607_v34  ;;  %v2622_v20 = vadd.f32 %v3420_v15, %v2025_v49  ;;  %v1497_v48 = vpop.f32.mrf.mxu0 }
 0x196   :  { %v2616_v40 = vpop.f32.mrf.mxu1  ;;  %1586 = vst.msk [vmem:[%s5420_s6 + $0x1d8] sm:$0xff] %vm1526_vm1, %v1503_v39  ;;  %v1498_v26 = vadd.f32 %v1497_v48, %v5496_v14 }
 0x197   :  { %2992 = vst.msk [vmem:[%s5420_s6 + $0x3d8] sm:$0xff] %vm1526_vm1, %v2622_v20  ;;  %v2617_v55 = vadd.f32 %v2616_v40, %v2020_v36  ;;  %v3313_v56 = vpop.f32.mrf.mxu0 }
 0x198   :  { %v3423_v42 = vpop.f32.mrf.mxu1  ;;  %1585 = vst.msk [vmem:[%s5420_s6 + $0x1d0] sm:$0xff] %vm1526_vm1, %v1498_v26  ;;  %v1513_v45 = vadd.f32 %v3313_v56, %v5497_v6 }
 0x199   :  { %2991 = vst.msk [vmem:[%s5420_s6 + $0x3d0] sm:$0xff] %vm1526_vm1, %v2617_v55  ;;  %v2632_v5 = vadd.f32 %v3423_v42, %v2035_v19  ;;  %v1507_v41 = vpop.f32.mrf.mxu0 }
 0x19a   :  { %v2626_v46 = vpop.f32.mrf.mxu1  ;;  %1588 = vst.msk [vmem:[%s5420_s6 + $0x1e8] sm:$0xff] %vm1526_vm1, %v1513_v45  ;;  %v1508_v4 = vadd.f32 %v1507_v41, %v5498_v23 }
 0x19b   :  { %2994 = vst.msk [vmem:[%s5420_s6 + $0x3e8] sm:$0xff] %vm1526_vm1, %v2632_v5  ;;  %v2627_v62 = vadd.f32 %v2626_v46, %v2030_v30  ;;  %v3316_v51 = vpop.f32.mrf.mxu0 }
 0x19c   :  { %v3426_v54 = vpop.f32.mrf.mxu1  ;;  %1587 = vst.msk [vmem:[%s5420_s6 + $0x1e0] sm:$0xff] %vm1526_vm1, %v1508_v4  ;;  %v1523_v22 = vadd.f32 %v3316_v51, %v5499_v12 }
 0x19d   :  { %2993 = vst.msk [vmem:[%s5420_s6 + $0x3e0] sm:$0xff] %vm1526_vm1, %v2627_v62  ;;  %v2642_v47 = vadd.f32 %v3426_v54, %v2045_v24  ;;  %v1517_v16 = vpop.f32.mrf.mxu0 }
 0x19e   :  { %v2636_v52 = vpop.f32.mrf.mxu1  ;;  %1590 = vst.msk [vmem:[%s5420_s6 + $0x1f8] sm:$0xff] %vm1526_vm1, %v1523_v22  ;;  %v1518_v58 = vadd.f32 %v1517_v16, %v5500_v2 }
 0x19f   :  { %2996 = vst.msk [vmem:[%s5420_s6 + $0x3f8] sm:$0xff] %vm1526_vm1, %v2642_v47  ;;  %v2637_v17 = vadd.f32 %v2636_v52, %v2040_v25 }
 0x1a0   :  { %1589 = vst.msk [vmem:[%s5420_s6 + $0x1f0] sm:$0xff] %vm1526_vm1, %v1518_v58 }
 0x1a1   :  { %2995 = vst.msk [vmem:[%s5420_s6 + $0x3f0] sm:$0xff] %vm1526_vm1, %v2637_v17 }

</bundles_post_ra>
